<compile_context>
chip_gen: v5e
topology: v5e:2x2
jax: 0.10.0
libtpu: 0.0.40
codegen_flags: <defaults>
</compile_context>

<pallas_src>
import math

import jax
import jax.numpy as jnp
from jax.experimental import pallas as pl
from jax.experimental.pallas import tpu as pltpu


# ----------------------------------------------------------------------------
# Fused Pallas kernel: 2-layer LSTM (wavefront) + last-valid-step + fc head
# ----------------------------------------------------------------------------
def stress_kernel(x_ref, len_ref,
                  wih0_ref, whh0_ref, b0_ref,
                  wih1_ref, whh1_ref, b1_ref,
                  w1_ref, fb1_ref,
                  gamma_ref, beta_ref, rmean_ref, rvar_ref,
                  w2_ref, fb2_ref,
                  out_ref):
    """Inputs:
       x_ref:     (T, B, I) f32  time-major input (bf16 cast happens in-kernel)
       len_ref:   (B, 1)    int32 sequence lengths (1 <= len <= T)
       wih*/whh*: (in, 4H)  bf16 pre-transposed LSTM weights, gate columns (i,f,o,g)
       b0/b1:     (1, 4H)   f32  b_ih + b_hh, same gate order
       w1/w2:     (in, out) bf16 fc weights; fb1/fb2 (1, out) f32 biases
       gamma/beta/rmean/rvar: (1, F1) f32 BatchNorm1d eval-mode params
       out_ref:   (B, OUT)  f32
    """
    f32 = jnp.float32
    bf16 = jnp.bfloat16

    T = x_ref.shape[0]
    B = len_ref.shape[0]
    H = whh0_ref.shape[0]

    lengths = len_ref[...]                         # (B, 1) int32

    # Hoist the weight / bias loads out of the unrolled loop.
    wih0 = wih0_ref[...]
    whh0 = whh0_ref[...]
    b0 = b0_ref[...]
    wih1 = wih1_ref[...]
    whh1 = whh1_ref[...]
    b1 = b1_ref[...]

    def gates(z, c):
        # z: (B, 4H) f32 pre-activations, gate order (i, f, o, g) after the
        # param-prep column permutation -> one sigmoid over a contiguous 3H block.
        sg = jax.nn.sigmoid(z[:, :3 * H])
        g_g = jnp.tanh(z[:, 3 * H:])
        i_g = sg[:, :H]
        f_g = sg[:, H:2 * H]
        o_g = sg[:, 2 * H:3 * H]
        c_new = f_g * c + i_g * g_g
        h_new = o_g * jnp.tanh(c_new)
        return h_new, c_new

    h0 = jnp.zeros((B, H), bf16)
    c0 = jnp.zeros((B, H), f32)
    h1 = jnp.zeros((B, H), bf16)
    c1 = jnp.zeros((B, H), f32)
    feat = jnp.zeros((B, H), f32)

    # Wavefront: iteration t runs layer-1 step (t-1) followed by layer-0 step t.
    # Both only read state produced in iteration t-1, so their matmuls are
    # independent; the layer-1 input projection is fused into its step
    # (dot(h0_{t-1}, wih1) + dot(h1_{t-2}, whh1)).
    for t in range(T + 1):
        if t >= 1:
            # layer-1 step t-1 (h0 still holds h0_{t-1} here)
            z1 = (jnp.dot(h0, wih1, preferred_element_type=f32)
                  + jnp.dot(h1, whh1, preferred_element_type=f32) + b1)
            h1f, c1 = gates(z1, c1)
            # h1f is the top-layer hidden state at time t-1 == packed-LSTM output
            # for sequences with len == t.
            feat = jnp.where(lengths == t, h1f, feat)
            h1 = h1f.astype(bf16)
        if t < T:
            # layer-0 step t; static leading-dim index -> one clean tile load.
            xt = x_ref[t].astype(bf16)
            z0 = (jnp.dot(xt, wih0, preferred_element_type=f32)
                  + jnp.dot(h0, whh0, preferred_element_type=f32) + b0)
            h0f, c0 = gates(z0, c0)
            h0 = h0f.astype(bf16)

    # ---- fused fc head (eval mode: Dropout = identity, BN uses running stats) -----
    slope = jnp.float32(0.01)
    eps = jnp.float32(1e-5)

    a = jnp.where(feat > 0, feat, slope * feat)                        # LeakyReLU
    y = (jnp.dot(a.astype(bf16), w1_ref[...], preferred_element_type=f32)
         + fb1_ref[...])                                               # Linear 1
    y = jnp.where(y > 0, y, slope * y)                                 # LeakyReLU
    y = (y - rmean_ref[...]) * jax.lax.rsqrt(rvar_ref[...] + eps)      # BatchNorm1d
    y = y * gamma_ref[...] + beta_ref[...]
    out_ref[...] = (jnp.dot(y.astype(bf16), w2_ref[...], preferred_element_type=f32)
                    + fb2_ref[...])                                    # Linear 2


# ----------------------------------------------------------------------------
# Wrapper
# ----------------------------------------------------------------------------
_VMEM = pl.BlockSpec(memory_space=pltpu.MemorySpace.VMEM)


def stress_network_forward(x, x_lens, params):
    """x: (B, T, I) float32 batch-first (PyTorch layout); x_lens: (B,) int -> (B, OUT)."""
    B, T, I = x.shape
    OUT = params["w2_t"].shape[1]

    # Single tiny layout op left in the wrapper (T*B*I*4 bytes): time-major so each
    # kernel step reads one full leading-dim tile.  Reshape + bf16 cast moved in-kernel.
    x_tm = jnp.transpose(x, (1, 0, 2))
    len_b1 = x_lens.astype(jnp.int32).reshape(B, 1)

    inputs = (
        x_tm, len_b1,
        params["wih0_t"], params["whh0_t"], params["b0"],
        params["wih1_t"], params["whh1_t"], params["b1"],
        params["w1_t"], params["fb1"],
        params["bn_gamma"], params["bn_beta"], params["bn_mean"], params["bn_var"],
        params["w2_t"], params["fb2"],
    )
    return pl.pallas_call(
        stress_kernel,
        out_shape=jax.ShapeDtypeStruct((B, OUT), jnp.float32),
        in_specs=[_VMEM] * len(inputs),
        out_specs=_VMEM,
    )(*inputs)


# ----------------------------------------------------------------------------
# Deterministic parameter init (mirrors module __init__ / init_weights)
# ----------------------------------------------------------------------------
def init_params(key, rnn_in, rnn_out, lin_in_1, lin_out_1, lin_in_2, lin_out_2):
    ks = jax.random.split(key, 10)
    H = rnn_out
    k_lstm = 1.0 / math.sqrt(H)

    def u(k, shape, bound):
        return jax.random.uniform(k, shape, jnp.float32, -bound, bound)

    def xavier(k, shape):  # shape = (fan_out, fan_in)
        bound = math.sqrt(6.0 / (shape[0] + shape[1]))
        return jax.random.uniform(k, shape, jnp.float32, -bound, bound)

    # LSTM (PyTorch default init; init_weights only touches nn.Linear)
    wih0 = u(ks[0], (4 * H, rnn_in), k_lstm)
    whh0 = u(ks[1], (4 * H, H), k_lstm)
    bih0 = u(ks[2], (4 * H,), k_lstm)
    bhh0 = u(ks[3], (4 * H,), k_lstm)
    wih1 = u(ks[4], (4 * H, H), k_lstm)
    whh1 = u(ks[5], (4 * H, H), k_lstm)
    bih1 = u(ks[6], (4 * H,), k_lstm)
    bhh1 = u(ks[7], (4 * H,), k_lstm)

    # fc head: Linear weights xavier_uniform, biases 0.01 (init_weights)
    w1 = xavier(ks[8], (lin_out_1, lin_in_1))
    fb1 = jnp.full((lin_out_1,), 0.01, jnp.float32)
    w2 = xavier(ks[9], (lin_out_2, lin_in_2))
    fb2 = jnp.full((lin_out_2,), 0.01, jnp.float32)

    def reorder_gates(w_t):
        # columns (i|f|g|o) -> (i|f|o|g): one sigmoid covers a contiguous 3H block.
        return jnp.concatenate([w_t[:, :2 * H], w_t[:, 3 * H:], w_t[:, 2 * H:3 * H]],
                               axis=1)

    bf16 = jnp.bfloat16
    return {
        # MXU operands in bf16 (accumulation stays f32 inside the kernel)
        "wih0_t": reorder_gates(wih0.T).astype(bf16),
        "whh0_t": reorder_gates(whh0.T).astype(bf16),
        "b0": reorder_gates((bih0 + bhh0).reshape(1, 4 * H)),
        "wih1_t": reorder_gates(wih1.T).astype(bf16),
        "whh1_t": reorder_gates(whh1.T).astype(bf16),
        "b1": reorder_gates((bih1 + bhh1).reshape(1, 4 * H)),
        "w1_t": w1.T.astype(bf16), "fb1": fb1.reshape(1, -1),
        "bn_gamma": jnp.ones((1, lin_in_2), jnp.float32),
        "bn_beta": jnp.zeros((1, lin_in_2), jnp.float32),
        "bn_mean": jnp.zeros((1, lin_in_2), jnp.float32),
        "bn_var": jnp.ones((1, lin_in_2), jnp.float32),
        "w2_t": w2.T.astype(bf16), "fb2": fb2.reshape(1, -1),
    }


if __name__ == "__main__":
    # ModelDimConfigs (small, consistent: rnn_out == lin_in_1, lin_out_1 == lin_in_2)
    B, T = 2, 8
    rnn_in, rnn_out = 8, 32
    lin_in_1, lin_out_1 = 32, 16
    lin_in_2, lin_out_2 = 16, 2

    key = jax.random.PRNGKey(0)
    k_x, k_p = jax.random.split(key)
    x = jax.random.normal(k_x, (B, T, rnn_in), jnp.float32)   # (B, T, I) batch-first
    x_lens = jnp.array([8, 5], dtype=jnp.int32)               # variable sequence lengths

    params = init_params(k_p, rnn_in, rnn_out, lin_in_1, lin_out_1, lin_in_2, lin_out_2)

    fwd = jax.jit(stress_network_forward)
    out = fwd(x, x_lens, params)
    out = jax.block_until_ready(out)
    assert out.shape == (B, lin_out_2) and out.dtype == jnp.float32
    assert bool(jnp.all(jnp.isfinite(out)))
    print("KERNEL_OK")
</pallas_src>

<mosaic_0001>
module attributes {stable_mosaic.version = 11 : i64} {
  func.func @stress_kernel(%arg0: memref<8x2x8xf32, #tpu.memory_space<vmem>>, %arg1: memref<2x1xi32, #tpu.memory_space<vmem>>, %arg2: memref<8x128xbf16, #tpu.memory_space<vmem>>, %arg3: memref<32x128xbf16, #tpu.memory_space<vmem>>, %arg4: memref<1x128xf32, #tpu.memory_space<vmem>>, %arg5: memref<32x128xbf16, #tpu.memory_space<vmem>>, %arg6: memref<32x128xbf16, #tpu.memory_space<vmem>>, %arg7: memref<1x128xf32, #tpu.memory_space<vmem>>, %arg8: memref<32x16xbf16, #tpu.memory_space<vmem>>, %arg9: memref<1x16xf32, #tpu.memory_space<vmem>>, %arg10: memref<1x16xf32, #tpu.memory_space<vmem>>, %arg11: memref<1x16xf32, #tpu.memory_space<vmem>>, %arg12: memref<1x16xf32, #tpu.memory_space<vmem>>, %arg13: memref<1x16xf32, #tpu.memory_space<vmem>>, %arg14: memref<16x2xbf16, #tpu.memory_space<vmem>>, %arg15: memref<1x2xf32, #tpu.memory_space<vmem>>, %arg16: memref<2x2xf32, #tpu.memory_space<vmem>>) attributes {dimension_semantics = [], scalar_prefetch = 0 : i64, scratch_operands = 0 : i64, tpu.core_type = #tpu.core_type<tc>} {
    %c0 = arith.constant 0 : index
    %c0_0 = arith.constant 0 : index
    %0 = vector.load %arg1[%c0, %c0_0] : memref<2x1xi32, #tpu.memory_space<vmem>>, vector<2x1xi32>
    %c0_1 = arith.constant 0 : index
    %c0_2 = arith.constant 0 : index
    %1 = vector.load %arg2[%c0_1, %c0_2] : memref<8x128xbf16, #tpu.memory_space<vmem>>, vector<8x128xbf16>
    %c0_3 = arith.constant 0 : index
    %c0_4 = arith.constant 0 : index
    %2 = vector.load %arg3[%c0_3, %c0_4] : memref<32x128xbf16, #tpu.memory_space<vmem>>, vector<32x128xbf16>
    %c0_5 = arith.constant 0 : index
    %c0_6 = arith.constant 0 : index
    %3 = vector.load %arg4[%c0_5, %c0_6] : memref<1x128xf32, #tpu.memory_space<vmem>>, vector<1x128xf32>
    %c0_7 = arith.constant 0 : index
    %c0_8 = arith.constant 0 : index
    %4 = vector.load %arg5[%c0_7, %c0_8] : memref<32x128xbf16, #tpu.memory_space<vmem>>, vector<32x128xbf16>
    %c0_9 = arith.constant 0 : index
    %c0_10 = arith.constant 0 : index
    %5 = vector.load %arg6[%c0_9, %c0_10] : memref<32x128xbf16, #tpu.memory_space<vmem>>, vector<32x128xbf16>
    %c0_11 = arith.constant 0 : index
    %c0_12 = arith.constant 0 : index
    %6 = vector.load %arg7[%c0_11, %c0_12] : memref<1x128xf32, #tpu.memory_space<vmem>>, vector<1x128xf32>
    %cst = arith.constant 0.000000e+00 : bf16
    %7 = vector.broadcast %cst : bf16 to vector<2x32xbf16>
    %cst_13 = arith.constant 0.000000e+00 : f32
    %8 = vector.broadcast %cst_13 : f32 to vector<2x32xf32>
    %cst_14 = arith.constant 0.000000e+00 : bf16
    %9 = vector.broadcast %cst_14 : bf16 to vector<2x32xbf16>
    %cst_15 = arith.constant 0.000000e+00 : f32
    %10 = vector.broadcast %cst_15 : f32 to vector<2x32xf32>
    %cst_16 = arith.constant 0.000000e+00 : f32
    %11 = vector.broadcast %cst_16 : f32 to vector<2x32xf32>
    %c0_17 = arith.constant 0 : index
    %c0_18 = arith.constant 0 : index
    %c0_19 = arith.constant 0 : index
    %12 = vector.load %arg0[%c0_17, %c0_18, %c0_19] : memref<8x2x8xf32, #tpu.memory_space<vmem>>, vector<1x2x8xf32>
    %13 = vector.shape_cast %12 : vector<1x2x8xf32> to vector<2x8xf32>
    %14 = arith.truncf %13 : vector<2x8xf32> to vector<2x8xbf16>
    %cst_20 = arith.constant dense<0.000000e+00> : vector<2x128xf32>
    %15 = tpu.matmul %14, %1, %cst_20 {dimension_numbers = #tpu.dot_dimension_numbers<[1], [0], [0], [1], [0, 0, 1, 1], [], []>} : vector<2x8xbf16>, vector<8x128xbf16>, vector<2x128xf32> -> vector<2x128xf32>
    %cst_21 = arith.constant dense<0.000000e+00> : vector<2x128xf32>
    %16 = tpu.matmul %7, %2, %cst_21 {dimension_numbers = #tpu.dot_dimension_numbers<[1], [0], [0], [1], [0, 0, 1, 1], [], []>} : vector<2x32xbf16>, vector<32x128xbf16>, vector<2x128xf32> -> vector<2x128xf32>
    %17 = arith.addf %15, %16 : vector<2x128xf32>
    %18 = vector.broadcast %3 : vector<1x128xf32> to vector<2x128xf32>
    %19 = arith.addf %17, %18 : vector<2x128xf32>
    %20 = vector.extract_strided_slice %19 {offsets = [0, 0], sizes = [2, 96], strides = [1, 1]} : vector<2x128xf32> to vector<2x96xf32>
    %21 = arith.negf %20 : vector<2x96xf32>
    %22 = math.exp %21 : vector<2x96xf32>
    %cst_22 = arith.constant 1.000000e+00 : f32
    %23 = vector.broadcast %cst_22 : f32 to vector<2x96xf32>
    %24 = arith.addf %23, %22 : vector<2x96xf32>
    %25 = arith.divf %23, %24 : vector<2x96xf32>
    %26 = vector.extract_strided_slice %19 {offsets = [0, 96], sizes = [2, 32], strides = [1, 1]} : vector<2x128xf32> to vector<2x32xf32>
    %27 = math.tanh %26 : vector<2x32xf32>
    %28 = vector.extract_strided_slice %25 {offsets = [0, 0], sizes = [2, 32], strides = [1, 1]} : vector<2x96xf32> to vector<2x32xf32>
    %29 = vector.extract_strided_slice %25 {offsets = [0, 32], sizes = [2, 32], strides = [1, 1]} : vector<2x96xf32> to vector<2x32xf32>
    %30 = vector.extract_strided_slice %25 {offsets = [0, 64], sizes = [2, 32], strides = [1, 1]} : vector<2x96xf32> to vector<2x32xf32>
    %31 = arith.mulf %29, %8 : vector<2x32xf32>
    %32 = arith.mulf %28, %27 : vector<2x32xf32>
    %33 = arith.addf %31, %32 : vector<2x32xf32>
    %34 = math.tanh %33 : vector<2x32xf32>
    %35 = arith.mulf %30, %34 : vector<2x32xf32>
    %36 = arith.truncf %35 : vector<2x32xf32> to vector<2x32xbf16>
    %cst_23 = arith.constant dense<0.000000e+00> : vector<2x128xf32>
    %37 = tpu.matmul %36, %4, %cst_23 {dimension_numbers = #tpu.dot_dimension_numbers<[1], [0], [0], [1], [0, 0, 1, 1], [], []>} : vector<2x32xbf16>, vector<32x128xbf16>, vector<2x128xf32> -> vector<2x128xf32>
    %cst_24 = arith.constant dense<0.000000e+00> : vector<2x128xf32>
    %38 = tpu.matmul %9, %5, %cst_24 {dimension_numbers = #tpu.dot_dimension_numbers<[1], [0], [0], [1], [0, 0, 1, 1], [], []>} : vector<2x32xbf16>, vector<32x128xbf16>, vector<2x128xf32> -> vector<2x128xf32>
    %39 = arith.addf %37, %38 : vector<2x128xf32>
    %40 = vector.broadcast %6 : vector<1x128xf32> to vector<2x128xf32>
    %41 = arith.addf %39, %40 : vector<2x128xf32>
    %42 = vector.extract_strided_slice %41 {offsets = [0, 0], sizes = [2, 96], strides = [1, 1]} : vector<2x128xf32> to vector<2x96xf32>
    %43 = arith.negf %42 : vector<2x96xf32>
    %44 = math.exp %43 : vector<2x96xf32>
    %cst_25 = arith.constant 1.000000e+00 : f32
    %45 = vector.broadcast %cst_25 : f32 to vector<2x96xf32>
    %46 = arith.addf %45, %44 : vector<2x96xf32>
    %47 = arith.divf %45, %46 : vector<2x96xf32>
    %48 = vector.extract_strided_slice %41 {offsets = [0, 96], sizes = [2, 32], strides = [1, 1]} : vector<2x128xf32> to vector<2x32xf32>
    %49 = math.tanh %48 : vector<2x32xf32>
    %50 = vector.extract_strided_slice %47 {offsets = [0, 0], sizes = [2, 32], strides = [1, 1]} : vector<2x96xf32> to vector<2x32xf32>
    %51 = vector.extract_strided_slice %47 {offsets = [0, 32], sizes = [2, 32], strides = [1, 1]} : vector<2x96xf32> to vector<2x32xf32>
    %52 = vector.extract_strided_slice %47 {offsets = [0, 64], sizes = [2, 32], strides = [1, 1]} : vector<2x96xf32> to vector<2x32xf32>
    %53 = arith.mulf %51, %10 : vector<2x32xf32>
    %54 = arith.mulf %50, %49 : vector<2x32xf32>
    %55 = arith.addf %53, %54 : vector<2x32xf32>
    %56 = math.tanh %55 : vector<2x32xf32>
    %57 = arith.mulf %52, %56 : vector<2x32xf32>
    %c1_i32 = arith.constant 1 : i32
    %58 = vector.broadcast %c1_i32 : i32 to vector<2x1xi32>
    %59 = arith.cmpi eq, %0, %58 : vector<2x1xi32>
    %60 = vector.shape_cast %59 : vector<2x1xi1> to vector<2x1xi1>
    %61 = vector.broadcast %60 : vector<2x1xi1> to vector<2x32xi1>
    %62 = arith.select %61, %57, %11 : vector<2x32xi1>, vector<2x32xf32>
    %63 = arith.truncf %57 : vector<2x32xf32> to vector<2x32xbf16>
    %c1 = arith.constant 1 : index
    %c0_26 = arith.constant 0 : index
    %c0_27 = arith.constant 0 : index
    %64 = vector.load %arg0[%c1, %c0_26, %c0_27] : memref<8x2x8xf32, #tpu.memory_space<vmem>>, vector<1x2x8xf32>
    %65 = vector.shape_cast %64 : vector<1x2x8xf32> to vector<2x8xf32>
    %66 = arith.truncf %65 : vector<2x8xf32> to vector<2x8xbf16>
    %cst_28 = arith.constant dense<0.000000e+00> : vector<2x128xf32>
    %67 = tpu.matmul %66, %1, %cst_28 {dimension_numbers = #tpu.dot_dimension_numbers<[1], [0], [0], [1], [0, 0, 1, 1], [], []>} : vector<2x8xbf16>, vector<8x128xbf16>, vector<2x128xf32> -> vector<2x128xf32>
    %cst_29 = arith.constant dense<0.000000e+00> : vector<2x128xf32>
    %68 = tpu.matmul %36, %2, %cst_29 {dimension_numbers = #tpu.dot_dimension_numbers<[1], [0], [0], [1], [0, 0, 1, 1], [], []>} : vector<2x32xbf16>, vector<32x128xbf16>, vector<2x128xf32> -> vector<2x128xf32>
    %69 = arith.addf %67, %68 : vector<2x128xf32>
    %70 = vector.broadcast %3 : vector<1x128xf32> to vector<2x128xf32>
    %71 = arith.addf %69, %70 : vector<2x128xf32>
    %72 = vector.extract_strided_slice %71 {offsets = [0, 0], sizes = [2, 96], strides = [1, 1]} : vector<2x128xf32> to vector<2x96xf32>
    %73 = arith.negf %72 : vector<2x96xf32>
    %74 = math.exp %73 : vector<2x96xf32>
    %cst_30 = arith.constant 1.000000e+00 : f32
    %75 = vector.broadcast %cst_30 : f32 to vector<2x96xf32>
    %76 = arith.addf %75, %74 : vector<2x96xf32>
    %77 = arith.divf %75, %76 : vector<2x96xf32>
    %78 = vector.extract_strided_slice %71 {offsets = [0, 96], sizes = [2, 32], strides = [1, 1]} : vector<2x128xf32> to vector<2x32xf32>
    %79 = math.tanh %78 : vector<2x32xf32>
    %80 = vector.extract_strided_slice %77 {offsets = [0, 0], sizes = [2, 32], strides = [1, 1]} : vector<2x96xf32> to vector<2x32xf32>
    %81 = vector.extract_strided_slice %77 {offsets = [0, 32], sizes = [2, 32], strides = [1, 1]} : vector<2x96xf32> to vector<2x32xf32>
    %82 = vector.extract_strided_slice %77 {offsets = [0, 64], sizes = [2, 32], strides = [1, 1]} : vector<2x96xf32> to vector<2x32xf32>
    %83 = arith.mulf %81, %33 : vector<2x32xf32>
    %84 = arith.mulf %80, %79 : vector<2x32xf32>
    %85 = arith.addf %83, %84 : vector<2x32xf32>
    %86 = math.tanh %85 : vector<2x32xf32>
    %87 = arith.mulf %82, %86 : vector<2x32xf32>
    %88 = arith.truncf %87 : vector<2x32xf32> to vector<2x32xbf16>
    %cst_31 = arith.constant dense<0.000000e+00> : vector<2x128xf32>
    %89 = tpu.matmul %88, %4, %cst_31 {dimension_numbers = #tpu.dot_dimension_numbers<[1], [0], [0], [1], [0, 0, 1, 1], [], []>} : vector<2x32xbf16>, vector<32x128xbf16>, vector<2x128xf32> -> vector<2x128xf32>
    %cst_32 = arith.constant dense<0.000000e+00> : vector<2x128xf32>
    %90 = tpu.matmul %63, %5, %cst_32 {dimension_numbers = #tpu.dot_dimension_numbers<[1], [0], [0], [1], [0, 0, 1, 1], [], []>} : vector<2x32xbf16>, vector<32x128xbf16>, vector<2x128xf32> -> vector<2x128xf32>
    %91 = arith.addf %89, %90 : vector<2x128xf32>
    %92 = vector.broadcast %6 : vector<1x128xf32> to vector<2x128xf32>
    %93 = arith.addf %91, %92 : vector<2x128xf32>
    %94 = vector.extract_strided_slice %93 {offsets = [0, 0], sizes = [2, 96], strides = [1, 1]} : vector<2x128xf32> to vector<2x96xf32>
    %95 = arith.negf %94 : vector<2x96xf32>
    %96 = math.exp %95 : vector<2x96xf32>
    %cst_33 = arith.constant 1.000000e+00 : f32
    %97 = vector.broadcast %cst_33 : f32 to vector<2x96xf32>
    %98 = arith.addf %97, %96 : vector<2x96xf32>
    %99 = arith.divf %97, %98 : vector<2x96xf32>
    %100 = vector.extract_strided_slice %93 {offsets = [0, 96], sizes = [2, 32], strides = [1, 1]} : vector<2x128xf32> to vector<2x32xf32>
    %101 = math.tanh %100 : vector<2x32xf32>
    %102 = vector.extract_strided_slice %99 {offsets = [0, 0], sizes = [2, 32], strides = [1, 1]} : vector<2x96xf32> to vector<2x32xf32>
    %103 = vector.extract_strided_slice %99 {offsets = [0, 32], sizes = [2, 32], strides = [1, 1]} : vector<2x96xf32> to vector<2x32xf32>
    %104 = vector.extract_strided_slice %99 {offsets = [0, 64], sizes = [2, 32], strides = [1, 1]} : vector<2x96xf32> to vector<2x32xf32>
    %105 = arith.mulf %103, %55 : vector<2x32xf32>
    %106 = arith.mulf %102, %101 : vector<2x32xf32>
    %107 = arith.addf %105, %106 : vector<2x32xf32>
    %108 = math.tanh %107 : vector<2x32xf32>
    %109 = arith.mulf %104, %108 : vector<2x32xf32>
    %c2_i32 = arith.constant 2 : i32
    %110 = vector.broadcast %c2_i32 : i32 to vector<2x1xi32>
    %111 = arith.cmpi eq, %0, %110 : vector<2x1xi32>
    %112 = vector.shape_cast %111 : vector<2x1xi1> to vector<2x1xi1>
    %113 = vector.broadcast %112 : vector<2x1xi1> to vector<2x32xi1>
    %114 = arith.select %113, %109, %62 : vector<2x32xi1>, vector<2x32xf32>
    %115 = arith.truncf %109 : vector<2x32xf32> to vector<2x32xbf16>
    %c2 = arith.constant 2 : index
    %c0_34 = arith.constant 0 : index
    %c0_35 = arith.constant 0 : index
    %116 = vector.load %arg0[%c2, %c0_34, %c0_35] : memref<8x2x8xf32, #tpu.memory_space<vmem>>, vector<1x2x8xf32>
    %117 = vector.shape_cast %116 : vector<1x2x8xf32> to vector<2x8xf32>
    %118 = arith.truncf %117 : vector<2x8xf32> to vector<2x8xbf16>
    %cst_36 = arith.constant dense<0.000000e+00> : vector<2x128xf32>
    %119 = tpu.matmul %118, %1, %cst_36 {dimension_numbers = #tpu.dot_dimension_numbers<[1], [0], [0], [1], [0, 0, 1, 1], [], []>} : vector<2x8xbf16>, vector<8x128xbf16>, vector<2x128xf32> -> vector<2x128xf32>
    %cst_37 = arith.constant dense<0.000000e+00> : vector<2x128xf32>
    %120 = tpu.matmul %88, %2, %cst_37 {dimension_numbers = #tpu.dot_dimension_numbers<[1], [0], [0], [1], [0, 0, 1, 1], [], []>} : vector<2x32xbf16>, vector<32x128xbf16>, vector<2x128xf32> -> vector<2x128xf32>
    %121 = arith.addf %119, %120 : vector<2x128xf32>
    %122 = vector.broadcast %3 : vector<1x128xf32> to vector<2x128xf32>
    %123 = arith.addf %121, %122 : vector<2x128xf32>
    %124 = vector.extract_strided_slice %123 {offsets = [0, 0], sizes = [2, 96], strides = [1, 1]} : vector<2x128xf32> to vector<2x96xf32>
    %125 = arith.negf %124 : vector<2x96xf32>
    %126 = math.exp %125 : vector<2x96xf32>
    %cst_38 = arith.constant 1.000000e+00 : f32
    %127 = vector.broadcast %cst_38 : f32 to vector<2x96xf32>
    %128 = arith.addf %127, %126 : vector<2x96xf32>
    %129 = arith.divf %127, %128 : vector<2x96xf32>
    %130 = vector.extract_strided_slice %123 {offsets = [0, 96], sizes = [2, 32], strides = [1, 1]} : vector<2x128xf32> to vector<2x32xf32>
    %131 = math.tanh %130 : vector<2x32xf32>
    %132 = vector.extract_strided_slice %129 {offsets = [0, 0], sizes = [2, 32], strides = [1, 1]} : vector<2x96xf32> to vector<2x32xf32>
    %133 = vector.extract_strided_slice %129 {offsets = [0, 32], sizes = [2, 32], strides = [1, 1]} : vector<2x96xf32> to vector<2x32xf32>
    %134 = vector.extract_strided_slice %129 {offsets = [0, 64], sizes = [2, 32], strides = [1, 1]} : vector<2x96xf32> to vector<2x32xf32>
    %135 = arith.mulf %133, %85 : vector<2x32xf32>
    %136 = arith.mulf %132, %131 : vector<2x32xf32>
    %137 = arith.addf %135, %136 : vector<2x32xf32>
    %138 = math.tanh %137 : vector<2x32xf32>
    %139 = arith.mulf %134, %138 : vector<2x32xf32>
    %140 = arith.truncf %139 : vector<2x32xf32> to vector<2x32xbf16>
    %cst_39 = arith.constant dense<0.000000e+00> : vector<2x128xf32>
    %141 = tpu.matmul %140, %4, %cst_39 {dimension_numbers = #tpu.dot_dimension_numbers<[1], [0], [0], [1], [0, 0, 1, 1], [], []>} : vector<2x32xbf16>, vector<32x128xbf16>, vector<2x128xf32> -> vector<2x128xf32>
    %cst_40 = arith.constant dense<0.000000e+00> : vector<2x128xf32>
    %142 = tpu.matmul %115, %5, %cst_40 {dimension_numbers = #tpu.dot_dimension_numbers<[1], [0], [0], [1], [0, 0, 1, 1], [], []>} : vector<2x32xbf16>, vector<32x128xbf16>, vector<2x128xf32> -> vector<2x128xf32>
    %143 = arith.addf %141, %142 : vector<2x128xf32>
    %144 = vector.broadcast %6 : vector<1x128xf32> to vector<2x128xf32>
    %145 = arith.addf %143, %144 : vector<2x128xf32>
    %146 = vector.extract_strided_slice %145 {offsets = [0, 0], sizes = [2, 96], strides = [1, 1]} : vector<2x128xf32> to vector<2x96xf32>
    %147 = arith.negf %146 : vector<2x96xf32>
    %148 = math.exp %147 : vector<2x96xf32>
    %cst_41 = arith.constant 1.000000e+00 : f32
    %149 = vector.broadcast %cst_41 : f32 to vector<2x96xf32>
    %150 = arith.addf %149, %148 : vector<2x96xf32>
    %151 = arith.divf %149, %150 : vector<2x96xf32>
    %152 = vector.extract_strided_slice %145 {offsets = [0, 96], sizes = [2, 32], strides = [1, 1]} : vector<2x128xf32> to vector<2x32xf32>
    %153 = math.tanh %152 : vector<2x32xf32>
    %154 = vector.extract_strided_slice %151 {offsets = [0, 0], sizes = [2, 32], strides = [1, 1]} : vector<2x96xf32> to vector<2x32xf32>
    %155 = vector.extract_strided_slice %151 {offsets = [0, 32], sizes = [2, 32], strides = [1, 1]} : vector<2x96xf32> to vector<2x32xf32>
    %156 = vector.extract_strided_slice %151 {offsets = [0, 64], sizes = [2, 32], strides = [1, 1]} : vector<2x96xf32> to vector<2x32xf32>
    %157 = arith.mulf %155, %107 : vector<2x32xf32>
    %158 = arith.mulf %154, %153 : vector<2x32xf32>
    %159 = arith.addf %157, %158 : vector<2x32xf32>
    %160 = math.tanh %159 : vector<2x32xf32>
    %161 = arith.mulf %156, %160 : vector<2x32xf32>
    %c3_i32 = arith.constant 3 : i32
    %162 = vector.broadcast %c3_i32 : i32 to vector<2x1xi32>
    %163 = arith.cmpi eq, %0, %162 : vector<2x1xi32>
    %164 = vector.shape_cast %163 : vector<2x1xi1> to vector<2x1xi1>
    %165 = vector.broadcast %164 : vector<2x1xi1> to vector<2x32xi1>
    %166 = arith.select %165, %161, %114 : vector<2x32xi1>, vector<2x32xf32>
    %167 = arith.truncf %161 : vector<2x32xf32> to vector<2x32xbf16>
    %c3 = arith.constant 3 : index
    %c0_42 = arith.constant 0 : index
    %c0_43 = arith.constant 0 : index
    %168 = vector.load %arg0[%c3, %c0_42, %c0_43] : memref<8x2x8xf32, #tpu.memory_space<vmem>>, vector<1x2x8xf32>
    %169 = vector.shape_cast %168 : vector<1x2x8xf32> to vector<2x8xf32>
    %170 = arith.truncf %169 : vector<2x8xf32> to vector<2x8xbf16>
    %cst_44 = arith.constant dense<0.000000e+00> : vector<2x128xf32>
    %171 = tpu.matmul %170, %1, %cst_44 {dimension_numbers = #tpu.dot_dimension_numbers<[1], [0], [0], [1], [0, 0, 1, 1], [], []>} : vector<2x8xbf16>, vector<8x128xbf16>, vector<2x128xf32> -> vector<2x128xf32>
    %cst_45 = arith.constant dense<0.000000e+00> : vector<2x128xf32>
    %172 = tpu.matmul %140, %2, %cst_45 {dimension_numbers = #tpu.dot_dimension_numbers<[1], [0], [0], [1], [0, 0, 1, 1], [], []>} : vector<2x32xbf16>, vector<32x128xbf16>, vector<2x128xf32> -> vector<2x128xf32>
    %173 = arith.addf %171, %172 : vector<2x128xf32>
    %174 = vector.broadcast %3 : vector<1x128xf32> to vector<2x128xf32>
    %175 = arith.addf %173, %174 : vector<2x128xf32>
    %176 = vector.extract_strided_slice %175 {offsets = [0, 0], sizes = [2, 96], strides = [1, 1]} : vector<2x128xf32> to vector<2x96xf32>
    %177 = arith.negf %176 : vector<2x96xf32>
    %178 = math.exp %177 : vector<2x96xf32>
    %cst_46 = arith.constant 1.000000e+00 : f32
    %179 = vector.broadcast %cst_46 : f32 to vector<2x96xf32>
    %180 = arith.addf %179, %178 : vector<2x96xf32>
    %181 = arith.divf %179, %180 : vector<2x96xf32>
    %182 = vector.extract_strided_slice %175 {offsets = [0, 96], sizes = [2, 32], strides = [1, 1]} : vector<2x128xf32> to vector<2x32xf32>
    %183 = math.tanh %182 : vector<2x32xf32>
    %184 = vector.extract_strided_slice %181 {offsets = [0, 0], sizes = [2, 32], strides = [1, 1]} : vector<2x96xf32> to vector<2x32xf32>
    %185 = vector.extract_strided_slice %181 {offsets = [0, 32], sizes = [2, 32], strides = [1, 1]} : vector<2x96xf32> to vector<2x32xf32>
    %186 = vector.extract_strided_slice %181 {offsets = [0, 64], sizes = [2, 32], strides = [1, 1]} : vector<2x96xf32> to vector<2x32xf32>
    %187 = arith.mulf %185, %137 : vector<2x32xf32>
    %188 = arith.mulf %184, %183 : vector<2x32xf32>
    %189 = arith.addf %187, %188 : vector<2x32xf32>
    %190 = math.tanh %189 : vector<2x32xf32>
    %191 = arith.mulf %186, %190 : vector<2x32xf32>
    %192 = arith.truncf %191 : vector<2x32xf32> to vector<2x32xbf16>
    %cst_47 = arith.constant dense<0.000000e+00> : vector<2x128xf32>
    %193 = tpu.matmul %192, %4, %cst_47 {dimension_numbers = #tpu.dot_dimension_numbers<[1], [0], [0], [1], [0, 0, 1, 1], [], []>} : vector<2x32xbf16>, vector<32x128xbf16>, vector<2x128xf32> -> vector<2x128xf32>
    %cst_48 = arith.constant dense<0.000000e+00> : vector<2x128xf32>
    %194 = tpu.matmul %167, %5, %cst_48 {dimension_numbers = #tpu.dot_dimension_numbers<[1], [0], [0], [1], [0, 0, 1, 1], [], []>} : vector<2x32xbf16>, vector<32x128xbf16>, vector<2x128xf32> -> vector<2x128xf32>
    %195 = arith.addf %193, %194 : vector<2x128xf32>
    %196 = vector.broadcast %6 : vector<1x128xf32> to vector<2x128xf32>
    %197 = arith.addf %195, %196 : vector<2x128xf32>
    %198 = vector.extract_strided_slice %197 {offsets = [0, 0], sizes = [2, 96], strides = [1, 1]} : vector<2x128xf32> to vector<2x96xf32>
    %199 = arith.negf %198 : vector<2x96xf32>
    %200 = math.exp %199 : vector<2x96xf32>
    %cst_49 = arith.constant 1.000000e+00 : f32
    %201 = vector.broadcast %cst_49 : f32 to vector<2x96xf32>
    %202 = arith.addf %201, %200 : vector<2x96xf32>
    %203 = arith.divf %201, %202 : vector<2x96xf32>
    %204 = vector.extract_strided_slice %197 {offsets = [0, 96], sizes = [2, 32], strides = [1, 1]} : vector<2x128xf32> to vector<2x32xf32>
    %205 = math.tanh %204 : vector<2x32xf32>
    %206 = vector.extract_strided_slice %203 {offsets = [0, 0], sizes = [2, 32], strides = [1, 1]} : vector<2x96xf32> to vector<2x32xf32>
    %207 = vector.extract_strided_slice %203 {offsets = [0, 32], sizes = [2, 32], strides = [1, 1]} : vector<2x96xf32> to vector<2x32xf32>
    %208 = vector.extract_strided_slice %203 {offsets = [0, 64], sizes = [2, 32], strides = [1, 1]} : vector<2x96xf32> to vector<2x32xf32>
    %209 = arith.mulf %207, %159 : vector<2x32xf32>
    %210 = arith.mulf %206, %205 : vector<2x32xf32>
    %211 = arith.addf %209, %210 : vector<2x32xf32>
    %212 = math.tanh %211 : vector<2x32xf32>
    %213 = arith.mulf %208, %212 : vector<2x32xf32>
    %c4_i32 = arith.constant 4 : i32
    %214 = vector.broadcast %c4_i32 : i32 to vector<2x1xi32>
    %215 = arith.cmpi eq, %0, %214 : vector<2x1xi32>
    %216 = vector.shape_cast %215 : vector<2x1xi1> to vector<2x1xi1>
    %217 = vector.broadcast %216 : vector<2x1xi1> to vector<2x32xi1>
    %218 = arith.select %217, %213, %166 : vector<2x32xi1>, vector<2x32xf32>
    %219 = arith.truncf %213 : vector<2x32xf32> to vector<2x32xbf16>
    %c4 = arith.constant 4 : index
    %c0_50 = arith.constant 0 : index
    %c0_51 = arith.constant 0 : index
    %220 = vector.load %arg0[%c4, %c0_50, %c0_51] : memref<8x2x8xf32, #tpu.memory_space<vmem>>, vector<1x2x8xf32>
    %221 = vector.shape_cast %220 : vector<1x2x8xf32> to vector<2x8xf32>
    %222 = arith.truncf %221 : vector<2x8xf32> to vector<2x8xbf16>
    %cst_52 = arith.constant dense<0.000000e+00> : vector<2x128xf32>
    %223 = tpu.matmul %222, %1, %cst_52 {dimension_numbers = #tpu.dot_dimension_numbers<[1], [0], [0], [1], [0, 0, 1, 1], [], []>} : vector<2x8xbf16>, vector<8x128xbf16>, vector<2x128xf32> -> vector<2x128xf32>
    %cst_53 = arith.constant dense<0.000000e+00> : vector<2x128xf32>
    %224 = tpu.matmul %192, %2, %cst_53 {dimension_numbers = #tpu.dot_dimension_numbers<[1], [0], [0], [1], [0, 0, 1, 1], [], []>} : vector<2x32xbf16>, vector<32x128xbf16>, vector<2x128xf32> -> vector<2x128xf32>
    %225 = arith.addf %223, %224 : vector<2x128xf32>
    %226 = vector.broadcast %3 : vector<1x128xf32> to vector<2x128xf32>
    %227 = arith.addf %225, %226 : vector<2x128xf32>
    %228 = vector.extract_strided_slice %227 {offsets = [0, 0], sizes = [2, 96], strides = [1, 1]} : vector<2x128xf32> to vector<2x96xf32>
    %229 = arith.negf %228 : vector<2x96xf32>
    %230 = math.exp %229 : vector<2x96xf32>
    %cst_54 = arith.constant 1.000000e+00 : f32
    %231 = vector.broadcast %cst_54 : f32 to vector<2x96xf32>
    %232 = arith.addf %231, %230 : vector<2x96xf32>
    %233 = arith.divf %231, %232 : vector<2x96xf32>
    %234 = vector.extract_strided_slice %227 {offsets = [0, 96], sizes = [2, 32], strides = [1, 1]} : vector<2x128xf32> to vector<2x32xf32>
    %235 = math.tanh %234 : vector<2x32xf32>
    %236 = vector.extract_strided_slice %233 {offsets = [0, 0], sizes = [2, 32], strides = [1, 1]} : vector<2x96xf32> to vector<2x32xf32>
    %237 = vector.extract_strided_slice %233 {offsets = [0, 32], sizes = [2, 32], strides = [1, 1]} : vector<2x96xf32> to vector<2x32xf32>
    %238 = vector.extract_strided_slice %233 {offsets = [0, 64], sizes = [2, 32], strides = [1, 1]} : vector<2x96xf32> to vector<2x32xf32>
    %239 = arith.mulf %237, %189 : vector<2x32xf32>
    %240 = arith.mulf %236, %235 : vector<2x32xf32>
    %241 = arith.addf %239, %240 : vector<2x32xf32>
    %242 = math.tanh %241 : vector<2x32xf32>
    %243 = arith.mulf %238, %242 : vector<2x32xf32>
    %244 = arith.truncf %243 : vector<2x32xf32> to vector<2x32xbf16>
    %cst_55 = arith.constant dense<0.000000e+00> : vector<2x128xf32>
    %245 = tpu.matmul %244, %4, %cst_55 {dimension_numbers = #tpu.dot_dimension_numbers<[1], [0], [0], [1], [0, 0, 1, 1], [], []>} : vector<2x32xbf16>, vector<32x128xbf16>, vector<2x128xf32> -> vector<2x128xf32>
    %cst_56 = arith.constant dense<0.000000e+00> : vector<2x128xf32>
    %246 = tpu.matmul %219, %5, %cst_56 {dimension_numbers = #tpu.dot_dimension_numbers<[1], [0], [0], [1], [0, 0, 1, 1], [], []>} : vector<2x32xbf16>, vector<32x128xbf16>, vector<2x128xf32> -> vector<2x128xf32>
    %247 = arith.addf %245, %246 : vector<2x128xf32>
    %248 = vector.broadcast %6 : vector<1x128xf32> to vector<2x128xf32>
    %249 = arith.addf %247, %248 : vector<2x128xf32>
    %250 = vector.extract_strided_slice %249 {offsets = [0, 0], sizes = [2, 96], strides = [1, 1]} : vector<2x128xf32> to vector<2x96xf32>
    %251 = arith.negf %250 : vector<2x96xf32>
    %252 = math.exp %251 : vector<2x96xf32>
    %cst_57 = arith.constant 1.000000e+00 : f32
    %253 = vector.broadcast %cst_57 : f32 to vector<2x96xf32>
    %254 = arith.addf %253, %252 : vector<2x96xf32>
    %255 = arith.divf %253, %254 : vector<2x96xf32>
    %256 = vector.extract_strided_slice %249 {offsets = [0, 96], sizes = [2, 32], strides = [1, 1]} : vector<2x128xf32> to vector<2x32xf32>
    %257 = math.tanh %256 : vector<2x32xf32>
    %258 = vector.extract_strided_slice %255 {offsets = [0, 0], sizes = [2, 32], strides = [1, 1]} : vector<2x96xf32> to vector<2x32xf32>
    %259 = vector.extract_strided_slice %255 {offsets = [0, 32], sizes = [2, 32], strides = [1, 1]} : vector<2x96xf32> to vector<2x32xf32>
    %260 = vector.extract_strided_slice %255 {offsets = [0, 64], sizes = [2, 32], strides = [1, 1]} : vector<2x96xf32> to vector<2x32xf32>
    %261 = arith.mulf %259, %211 : vector<2x32xf32>
    %262 = arith.mulf %258, %257 : vector<2x32xf32>
    %263 = arith.addf %261, %262 : vector<2x32xf32>
    %264 = math.tanh %263 : vector<2x32xf32>
    %265 = arith.mulf %260, %264 : vector<2x32xf32>
    %c5_i32 = arith.constant 5 : i32
    %266 = vector.broadcast %c5_i32 : i32 to vector<2x1xi32>
    %267 = arith.cmpi eq, %0, %266 : vector<2x1xi32>
    %268 = vector.shape_cast %267 : vector<2x1xi1> to vector<2x1xi1>
    %269 = vector.broadcast %268 : vector<2x1xi1> to vector<2x32xi1>
    %270 = arith.select %269, %265, %218 : vector<2x32xi1>, vector<2x32xf32>
    %271 = arith.truncf %265 : vector<2x32xf32> to vector<2x32xbf16>
    %c5 = arith.constant 5 : index
    %c0_58 = arith.constant 0 : index
    %c0_59 = arith.constant 0 : index
    %272 = vector.load %arg0[%c5, %c0_58, %c0_59] : memref<8x2x8xf32, #tpu.memory_space<vmem>>, vector<1x2x8xf32>
    %273 = vector.shape_cast %272 : vector<1x2x8xf32> to vector<2x8xf32>
    %274 = arith.truncf %273 : vector<2x8xf32> to vector<2x8xbf16>
    %cst_60 = arith.constant dense<0.000000e+00> : vector<2x128xf32>
    %275 = tpu.matmul %274, %1, %cst_60 {dimension_numbers = #tpu.dot_dimension_numbers<[1], [0], [0], [1], [0, 0, 1, 1], [], []>} : vector<2x8xbf16>, vector<8x128xbf16>, vector<2x128xf32> -> vector<2x128xf32>
    %cst_61 = arith.constant dense<0.000000e+00> : vector<2x128xf32>
    %276 = tpu.matmul %244, %2, %cst_61 {dimension_numbers = #tpu.dot_dimension_numbers<[1], [0], [0], [1], [0, 0, 1, 1], [], []>} : vector<2x32xbf16>, vector<32x128xbf16>, vector<2x128xf32> -> vector<2x128xf32>
    %277 = arith.addf %275, %276 : vector<2x128xf32>
    %278 = vector.broadcast %3 : vector<1x128xf32> to vector<2x128xf32>
    %279 = arith.addf %277, %278 : vector<2x128xf32>
    %280 = vector.extract_strided_slice %279 {offsets = [0, 0], sizes = [2, 96], strides = [1, 1]} : vector<2x128xf32> to vector<2x96xf32>
    %281 = arith.negf %280 : vector<2x96xf32>
    %282 = math.exp %281 : vector<2x96xf32>
    %cst_62 = arith.constant 1.000000e+00 : f32
    %283 = vector.broadcast %cst_62 : f32 to vector<2x96xf32>
    %284 = arith.addf %283, %282 : vector<2x96xf32>
    %285 = arith.divf %283, %284 : vector<2x96xf32>
    %286 = vector.extract_strided_slice %279 {offsets = [0, 96], sizes = [2, 32], strides = [1, 1]} : vector<2x128xf32> to vector<2x32xf32>
    %287 = math.tanh %286 : vector<2x32xf32>
    %288 = vector.extract_strided_slice %285 {offsets = [0, 0], sizes = [2, 32], strides = [1, 1]} : vector<2x96xf32> to vector<2x32xf32>
    %289 = vector.extract_strided_slice %285 {offsets = [0, 32], sizes = [2, 32], strides = [1, 1]} : vector<2x96xf32> to vector<2x32xf32>
    %290 = vector.extract_strided_slice %285 {offsets = [0, 64], sizes = [2, 32], strides = [1, 1]} : vector<2x96xf32> to vector<2x32xf32>
    %291 = arith.mulf %289, %241 : vector<2x32xf32>
    %292 = arith.mulf %288, %287 : vector<2x32xf32>
    %293 = arith.addf %291, %292 : vector<2x32xf32>
    %294 = math.tanh %293 : vector<2x32xf32>
    %295 = arith.mulf %290, %294 : vector<2x32xf32>
    %296 = arith.truncf %295 : vector<2x32xf32> to vector<2x32xbf16>
    %cst_63 = arith.constant dense<0.000000e+00> : vector<2x128xf32>
    %297 = tpu.matmul %296, %4, %cst_63 {dimension_numbers = #tpu.dot_dimension_numbers<[1], [0], [0], [1], [0, 0, 1, 1], [], []>} : vector<2x32xbf16>, vector<32x128xbf16>, vector<2x128xf32> -> vector<2x128xf32>
    %cst_64 = arith.constant dense<0.000000e+00> : vector<2x128xf32>
    %298 = tpu.matmul %271, %5, %cst_64 {dimension_numbers = #tpu.dot_dimension_numbers<[1], [0], [0], [1], [0, 0, 1, 1], [], []>} : vector<2x32xbf16>, vector<32x128xbf16>, vector<2x128xf32> -> vector<2x128xf32>
    %299 = arith.addf %297, %298 : vector<2x128xf32>
    %300 = vector.broadcast %6 : vector<1x128xf32> to vector<2x128xf32>
    %301 = arith.addf %299, %300 : vector<2x128xf32>
    %302 = vector.extract_strided_slice %301 {offsets = [0, 0], sizes = [2, 96], strides = [1, 1]} : vector<2x128xf32> to vector<2x96xf32>
    %303 = arith.negf %302 : vector<2x96xf32>
    %304 = math.exp %303 : vector<2x96xf32>
    %cst_65 = arith.constant 1.000000e+00 : f32
    %305 = vector.broadcast %cst_65 : f32 to vector<2x96xf32>
    %306 = arith.addf %305, %304 : vector<2x96xf32>
    %307 = arith.divf %305, %306 : vector<2x96xf32>
    %308 = vector.extract_strided_slice %301 {offsets = [0, 96], sizes = [2, 32], strides = [1, 1]} : vector<2x128xf32> to vector<2x32xf32>
    %309 = math.tanh %308 : vector<2x32xf32>
    %310 = vector.extract_strided_slice %307 {offsets = [0, 0], sizes = [2, 32], strides = [1, 1]} : vector<2x96xf32> to vector<2x32xf32>
    %311 = vector.extract_strided_slice %307 {offsets = [0, 32], sizes = [2, 32], strides = [1, 1]} : vector<2x96xf32> to vector<2x32xf32>
    %312 = vector.extract_strided_slice %307 {offsets = [0, 64], sizes = [2, 32], strides = [1, 1]} : vector<2x96xf32> to vector<2x32xf32>
    %313 = arith.mulf %311, %263 : vector<2x32xf32>
    %314 = arith.mulf %310, %309 : vector<2x32xf32>
    %315 = arith.addf %313, %314 : vector<2x32xf32>
    %316 = math.tanh %315 : vector<2x32xf32>
    %317 = arith.mulf %312, %316 : vector<2x32xf32>
    %c6_i32 = arith.constant 6 : i32
    %318 = vector.broadcast %c6_i32 : i32 to vector<2x1xi32>
    %319 = arith.cmpi eq, %0, %318 : vector<2x1xi32>
    %320 = vector.shape_cast %319 : vector<2x1xi1> to vector<2x1xi1>
    %321 = vector.broadcast %320 : vector<2x1xi1> to vector<2x32xi1>
    %322 = arith.select %321, %317, %270 : vector<2x32xi1>, vector<2x32xf32>
    %323 = arith.truncf %317 : vector<2x32xf32> to vector<2x32xbf16>
    %c6 = arith.constant 6 : index
    %c0_66 = arith.constant 0 : index
    %c0_67 = arith.constant 0 : index
    %324 = vector.load %arg0[%c6, %c0_66, %c0_67] : memref<8x2x8xf32, #tpu.memory_space<vmem>>, vector<1x2x8xf32>
    %325 = vector.shape_cast %324 : vector<1x2x8xf32> to vector<2x8xf32>
    %326 = arith.truncf %325 : vector<2x8xf32> to vector<2x8xbf16>
    %cst_68 = arith.constant dense<0.000000e+00> : vector<2x128xf32>
    %327 = tpu.matmul %326, %1, %cst_68 {dimension_numbers = #tpu.dot_dimension_numbers<[1], [0], [0], [1], [0, 0, 1, 1], [], []>} : vector<2x8xbf16>, vector<8x128xbf16>, vector<2x128xf32> -> vector<2x128xf32>
    %cst_69 = arith.constant dense<0.000000e+00> : vector<2x128xf32>
    %328 = tpu.matmul %296, %2, %cst_69 {dimension_numbers = #tpu.dot_dimension_numbers<[1], [0], [0], [1], [0, 0, 1, 1], [], []>} : vector<2x32xbf16>, vector<32x128xbf16>, vector<2x128xf32> -> vector<2x128xf32>
    %329 = arith.addf %327, %328 : vector<2x128xf32>
    %330 = vector.broadcast %3 : vector<1x128xf32> to vector<2x128xf32>
    %331 = arith.addf %329, %330 : vector<2x128xf32>
    %332 = vector.extract_strided_slice %331 {offsets = [0, 0], sizes = [2, 96], strides = [1, 1]} : vector<2x128xf32> to vector<2x96xf32>
    %333 = arith.negf %332 : vector<2x96xf32>
    %334 = math.exp %333 : vector<2x96xf32>
    %cst_70 = arith.constant 1.000000e+00 : f32
    %335 = vector.broadcast %cst_70 : f32 to vector<2x96xf32>
    %336 = arith.addf %335, %334 : vector<2x96xf32>
    %337 = arith.divf %335, %336 : vector<2x96xf32>
    %338 = vector.extract_strided_slice %331 {offsets = [0, 96], sizes = [2, 32], strides = [1, 1]} : vector<2x128xf32> to vector<2x32xf32>
    %339 = math.tanh %338 : vector<2x32xf32>
    %340 = vector.extract_strided_slice %337 {offsets = [0, 0], sizes = [2, 32], strides = [1, 1]} : vector<2x96xf32> to vector<2x32xf32>
    %341 = vector.extract_strided_slice %337 {offsets = [0, 32], sizes = [2, 32], strides = [1, 1]} : vector<2x96xf32> to vector<2x32xf32>
    %342 = vector.extract_strided_slice %337 {offsets = [0, 64], sizes = [2, 32], strides = [1, 1]} : vector<2x96xf32> to vector<2x32xf32>
    %343 = arith.mulf %341, %293 : vector<2x32xf32>
    %344 = arith.mulf %340, %339 : vector<2x32xf32>
    %345 = arith.addf %343, %344 : vector<2x32xf32>
    %346 = math.tanh %345 : vector<2x32xf32>
    %347 = arith.mulf %342, %346 : vector<2x32xf32>
    %348 = arith.truncf %347 : vector<2x32xf32> to vector<2x32xbf16>
    %cst_71 = arith.constant dense<0.000000e+00> : vector<2x128xf32>
    %349 = tpu.matmul %348, %4, %cst_71 {dimension_numbers = #tpu.dot_dimension_numbers<[1], [0], [0], [1], [0, 0, 1, 1], [], []>} : vector<2x32xbf16>, vector<32x128xbf16>, vector<2x128xf32> -> vector<2x128xf32>
    %cst_72 = arith.constant dense<0.000000e+00> : vector<2x128xf32>
    %350 = tpu.matmul %323, %5, %cst_72 {dimension_numbers = #tpu.dot_dimension_numbers<[1], [0], [0], [1], [0, 0, 1, 1], [], []>} : vector<2x32xbf16>, vector<32x128xbf16>, vector<2x128xf32> -> vector<2x128xf32>
    %351 = arith.addf %349, %350 : vector<2x128xf32>
    %352 = vector.broadcast %6 : vector<1x128xf32> to vector<2x128xf32>
    %353 = arith.addf %351, %352 : vector<2x128xf32>
    %354 = vector.extract_strided_slice %353 {offsets = [0, 0], sizes = [2, 96], strides = [1, 1]} : vector<2x128xf32> to vector<2x96xf32>
    %355 = arith.negf %354 : vector<2x96xf32>
    %356 = math.exp %355 : vector<2x96xf32>
    %cst_73 = arith.constant 1.000000e+00 : f32
    %357 = vector.broadcast %cst_73 : f32 to vector<2x96xf32>
    %358 = arith.addf %357, %356 : vector<2x96xf32>
    %359 = arith.divf %357, %358 : vector<2x96xf32>
    %360 = vector.extract_strided_slice %353 {offsets = [0, 96], sizes = [2, 32], strides = [1, 1]} : vector<2x128xf32> to vector<2x32xf32>
    %361 = math.tanh %360 : vector<2x32xf32>
    %362 = vector.extract_strided_slice %359 {offsets = [0, 0], sizes = [2, 32], strides = [1, 1]} : vector<2x96xf32> to vector<2x32xf32>
    %363 = vector.extract_strided_slice %359 {offsets = [0, 32], sizes = [2, 32], strides = [1, 1]} : vector<2x96xf32> to vector<2x32xf32>
    %364 = vector.extract_strided_slice %359 {offsets = [0, 64], sizes = [2, 32], strides = [1, 1]} : vector<2x96xf32> to vector<2x32xf32>
    %365 = arith.mulf %363, %315 : vector<2x32xf32>
    %366 = arith.mulf %362, %361 : vector<2x32xf32>
    %367 = arith.addf %365, %366 : vector<2x32xf32>
    %368 = math.tanh %367 : vector<2x32xf32>
    %369 = arith.mulf %364, %368 : vector<2x32xf32>
    %c7_i32 = arith.constant 7 : i32
    %370 = vector.broadcast %c7_i32 : i32 to vector<2x1xi32>
    %371 = arith.cmpi eq, %0, %370 : vector<2x1xi32>
    %372 = vector.shape_cast %371 : vector<2x1xi1> to vector<2x1xi1>
    %373 = vector.broadcast %372 : vector<2x1xi1> to vector<2x32xi1>
    %374 = arith.select %373, %369, %322 : vector<2x32xi1>, vector<2x32xf32>
    %375 = arith.truncf %369 : vector<2x32xf32> to vector<2x32xbf16>
    %c7 = arith.constant 7 : index
    %c0_74 = arith.constant 0 : index
    %c0_75 = arith.constant 0 : index
    %376 = vector.load %arg0[%c7, %c0_74, %c0_75] : memref<8x2x8xf32, #tpu.memory_space<vmem>>, vector<1x2x8xf32>
    %377 = vector.shape_cast %376 : vector<1x2x8xf32> to vector<2x8xf32>
    %378 = arith.truncf %377 : vector<2x8xf32> to vector<2x8xbf16>
    %cst_76 = arith.constant dense<0.000000e+00> : vector<2x128xf32>
    %379 = tpu.matmul %378, %1, %cst_76 {dimension_numbers = #tpu.dot_dimension_numbers<[1], [0], [0], [1], [0, 0, 1, 1], [], []>} : vector<2x8xbf16>, vector<8x128xbf16>, vector<2x128xf32> -> vector<2x128xf32>
    %cst_77 = arith.constant dense<0.000000e+00> : vector<2x128xf32>
    %380 = tpu.matmul %348, %2, %cst_77 {dimension_numbers = #tpu.dot_dimension_numbers<[1], [0], [0], [1], [0, 0, 1, 1], [], []>} : vector<2x32xbf16>, vector<32x128xbf16>, vector<2x128xf32> -> vector<2x128xf32>
    %381 = arith.addf %379, %380 : vector<2x128xf32>
    %382 = vector.broadcast %3 : vector<1x128xf32> to vector<2x128xf32>
    %383 = arith.addf %381, %382 : vector<2x128xf32>
    %384 = vector.extract_strided_slice %383 {offsets = [0, 0], sizes = [2, 96], strides = [1, 1]} : vector<2x128xf32> to vector<2x96xf32>
    %385 = arith.negf %384 : vector<2x96xf32>
    %386 = math.exp %385 : vector<2x96xf32>
    %cst_78 = arith.constant 1.000000e+00 : f32
    %387 = vector.broadcast %cst_78 : f32 to vector<2x96xf32>
    %388 = arith.addf %387, %386 : vector<2x96xf32>
    %389 = arith.divf %387, %388 : vector<2x96xf32>
    %390 = vector.extract_strided_slice %383 {offsets = [0, 96], sizes = [2, 32], strides = [1, 1]} : vector<2x128xf32> to vector<2x32xf32>
    %391 = math.tanh %390 : vector<2x32xf32>
    %392 = vector.extract_strided_slice %389 {offsets = [0, 0], sizes = [2, 32], strides = [1, 1]} : vector<2x96xf32> to vector<2x32xf32>
    %393 = vector.extract_strided_slice %389 {offsets = [0, 32], sizes = [2, 32], strides = [1, 1]} : vector<2x96xf32> to vector<2x32xf32>
    %394 = vector.extract_strided_slice %389 {offsets = [0, 64], sizes = [2, 32], strides = [1, 1]} : vector<2x96xf32> to vector<2x32xf32>
    %395 = arith.mulf %393, %345 : vector<2x32xf32>
    %396 = arith.mulf %392, %391 : vector<2x32xf32>
    %397 = arith.addf %395, %396 : vector<2x32xf32>
    %398 = math.tanh %397 : vector<2x32xf32>
    %399 = arith.mulf %394, %398 : vector<2x32xf32>
    %400 = arith.truncf %399 : vector<2x32xf32> to vector<2x32xbf16>
    %cst_79 = arith.constant dense<0.000000e+00> : vector<2x128xf32>
    %401 = tpu.matmul %400, %4, %cst_79 {dimension_numbers = #tpu.dot_dimension_numbers<[1], [0], [0], [1], [0, 0, 1, 1], [], []>} : vector<2x32xbf16>, vector<32x128xbf16>, vector<2x128xf32> -> vector<2x128xf32>
    %cst_80 = arith.constant dense<0.000000e+00> : vector<2x128xf32>
    %402 = tpu.matmul %375, %5, %cst_80 {dimension_numbers = #tpu.dot_dimension_numbers<[1], [0], [0], [1], [0, 0, 1, 1], [], []>} : vector<2x32xbf16>, vector<32x128xbf16>, vector<2x128xf32> -> vector<2x128xf32>
    %403 = arith.addf %401, %402 : vector<2x128xf32>
    %404 = vector.broadcast %6 : vector<1x128xf32> to vector<2x128xf32>
    %405 = arith.addf %403, %404 : vector<2x128xf32>
    %406 = vector.extract_strided_slice %405 {offsets = [0, 0], sizes = [2, 96], strides = [1, 1]} : vector<2x128xf32> to vector<2x96xf32>
    %407 = arith.negf %406 : vector<2x96xf32>
    %408 = math.exp %407 : vector<2x96xf32>
    %cst_81 = arith.constant 1.000000e+00 : f32
    %409 = vector.broadcast %cst_81 : f32 to vector<2x96xf32>
    %410 = arith.addf %409, %408 : vector<2x96xf32>
    %411 = arith.divf %409, %410 : vector<2x96xf32>
    %412 = vector.extract_strided_slice %405 {offsets = [0, 96], sizes = [2, 32], strides = [1, 1]} : vector<2x128xf32> to vector<2x32xf32>
    %413 = math.tanh %412 : vector<2x32xf32>
    %414 = vector.extract_strided_slice %411 {offsets = [0, 0], sizes = [2, 32], strides = [1, 1]} : vector<2x96xf32> to vector<2x32xf32>
    %415 = vector.extract_strided_slice %411 {offsets = [0, 32], sizes = [2, 32], strides = [1, 1]} : vector<2x96xf32> to vector<2x32xf32>
    %416 = vector.extract_strided_slice %411 {offsets = [0, 64], sizes = [2, 32], strides = [1, 1]} : vector<2x96xf32> to vector<2x32xf32>
    %417 = arith.mulf %415, %367 : vector<2x32xf32>
    %418 = arith.mulf %414, %413 : vector<2x32xf32>
    %419 = arith.addf %417, %418 : vector<2x32xf32>
    %420 = math.tanh %419 : vector<2x32xf32>
    %421 = arith.mulf %416, %420 : vector<2x32xf32>
    %c8_i32 = arith.constant 8 : i32
    %422 = vector.broadcast %c8_i32 : i32 to vector<2x1xi32>
    %423 = arith.cmpi eq, %0, %422 : vector<2x1xi32>
    %424 = vector.shape_cast %423 : vector<2x1xi1> to vector<2x1xi1>
    %425 = vector.broadcast %424 : vector<2x1xi1> to vector<2x32xi1>
    %426 = arith.select %425, %421, %374 : vector<2x32xi1>, vector<2x32xf32>
    %cst_82 = arith.constant 0.000000e+00 : f32
    %427 = vector.broadcast %cst_82 : f32 to vector<2x32xf32>
    %428 = arith.cmpf ogt, %426, %427 : vector<2x32xf32>
    %cst_83 = arith.constant 0.00999999977 : f32
    %429 = vector.broadcast %cst_83 : f32 to vector<2x32xf32>
    %430 = arith.mulf %429, %426 : vector<2x32xf32>
    %431 = arith.select %428, %426, %430 : vector<2x32xi1>, vector<2x32xf32>
    %432 = arith.truncf %431 : vector<2x32xf32> to vector<2x32xbf16>
    %c0_84 = arith.constant 0 : index
    %c0_85 = arith.constant 0 : index
    %433 = vector.load %arg8[%c0_84, %c0_85] : memref<32x16xbf16, #tpu.memory_space<vmem>>, vector<32x16xbf16>
    %cst_86 = arith.constant dense<0.000000e+00> : vector<2x16xf32>
    %434 = tpu.matmul %432, %433, %cst_86 {dimension_numbers = #tpu.dot_dimension_numbers<[1], [0], [0], [1], [0, 0, 1, 1], [], []>} : vector<2x32xbf16>, vector<32x16xbf16>, vector<2x16xf32> -> vector<2x16xf32>
    %c0_87 = arith.constant 0 : index
    %c0_88 = arith.constant 0 : index
    %435 = vector.load %arg9[%c0_87, %c0_88] : memref<1x16xf32, #tpu.memory_space<vmem>>, vector<1x16xf32>
    %436 = vector.broadcast %435 : vector<1x16xf32> to vector<2x16xf32>
    %437 = arith.addf %434, %436 : vector<2x16xf32>
    %cst_89 = arith.constant 0.000000e+00 : f32
    %438 = vector.broadcast %cst_89 : f32 to vector<2x16xf32>
    %439 = arith.cmpf ogt, %437, %438 : vector<2x16xf32>
    %cst_90 = arith.constant 0.00999999977 : f32
    %440 = vector.broadcast %cst_90 : f32 to vector<2x16xf32>
    %441 = arith.mulf %440, %437 : vector<2x16xf32>
    %442 = arith.select %439, %437, %441 : vector<2x16xi1>, vector<2x16xf32>
    %c0_91 = arith.constant 0 : index
    %c0_92 = arith.constant 0 : index
    %443 = vector.load %arg12[%c0_91, %c0_92] : memref<1x16xf32, #tpu.memory_space<vmem>>, vector<1x16xf32>
    %444 = vector.broadcast %443 : vector<1x16xf32> to vector<2x16xf32>
    %445 = arith.subf %442, %444 : vector<2x16xf32>
    %c0_93 = arith.constant 0 : index
    %c0_94 = arith.constant 0 : index
    %446 = vector.load %arg13[%c0_93, %c0_94] : memref<1x16xf32, #tpu.memory_space<vmem>>, vector<1x16xf32>
    %cst_95 = arith.constant 9.99999974E-6 : f32
    %447 = vector.broadcast %cst_95 : f32 to vector<1x16xf32>
    %448 = arith.addf %446, %447 : vector<1x16xf32>
    %449 = math.rsqrt %448 : vector<1x16xf32>
    %450 = vector.broadcast %449 : vector<1x16xf32> to vector<2x16xf32>
    %451 = arith.mulf %445, %450 : vector<2x16xf32>
    %c0_96 = arith.constant 0 : index
    %c0_97 = arith.constant 0 : index
    %452 = vector.load %arg10[%c0_96, %c0_97] : memref<1x16xf32, #tpu.memory_space<vmem>>, vector<1x16xf32>
    %453 = vector.broadcast %452 : vector<1x16xf32> to vector<2x16xf32>
    %454 = arith.mulf %451, %453 : vector<2x16xf32>
    %c0_98 = arith.constant 0 : index
    %c0_99 = arith.constant 0 : index
    %455 = vector.load %arg11[%c0_98, %c0_99] : memref<1x16xf32, #tpu.memory_space<vmem>>, vector<1x16xf32>
    %456 = vector.broadcast %455 : vector<1x16xf32> to vector<2x16xf32>
    %457 = arith.addf %454, %456 : vector<2x16xf32>
    %458 = arith.truncf %457 : vector<2x16xf32> to vector<2x16xbf16>
    %c0_100 = arith.constant 0 : index
    %c0_101 = arith.constant 0 : index
    %459 = vector.load %arg14[%c0_100, %c0_101] : memref<16x2xbf16, #tpu.memory_space<vmem>>, vector<16x2xbf16>
    %cst_102 = arith.constant dense<0.000000e+00> : vector<2x2xf32>
    %460 = tpu.matmul %458, %459, %cst_102 {dimension_numbers = #tpu.dot_dimension_numbers<[1], [0], [0], [1], [0, 0, 1, 1], [], []>} : vector<2x16xbf16>, vector<16x2xbf16>, vector<2x2xf32> -> vector<2x2xf32>
    %c0_103 = arith.constant 0 : index
    %c0_104 = arith.constant 0 : index
    %461 = vector.load %arg15[%c0_103, %c0_104] : memref<1x2xf32, #tpu.memory_space<vmem>>, vector<1x2xf32>
    %462 = vector.broadcast %461 : vector<1x2xf32> to vector<2x2xf32>
    %463 = arith.addf %460, %462 : vector<2x2xf32>
    %c0_105 = arith.constant 0 : index
    %c0_106 = arith.constant 0 : index
    %464 = vector.load %arg16[%c0_105, %c0_106] : memref<2x2xf32, #tpu.memory_space<vmem>>, vector<2x2xf32>
    tpu.vector_store %arg16[%c0_105, %c0_106], %463 {strides = array<i32>} : memref<2x2xf32, #tpu.memory_space<vmem>>, vector<2x2xf32>,
    return
  }
}

</mosaic_0001>

<bundles_post_ra>
// kernel: stress_network_forward.1
= control target key start
LH: loop header
LB: loop body
LE: loop exit
PB: predicated region body
PF: predicated region fallthrough
CT: control target
= control target key end

     0   :  { %s2236_s0 = inlined_call_operand.vmem [shape: f32[8,2,8], index: 0, kind: input, shape index: {}]   ;;  %s2237_s1 = inlined_call_operand.vmem [shape: s32[2,1], index: 1, kind: input, shape index: {}]   ;;  %s2238_s2 = inlined_call_operand.vmem [shape: bf16[8,128], index: 2, kind: input, shape index: {}]   ;;  %s2239_s3 = inlined_call_operand.vmem [shape: bf16[32,128], index: 3, kind: input, shape index: {}]   ;;  %s2240_s4 = inlined_call_operand.vmem [shape: f32[1,128], index: 4, kind: input, shape index: {}]   ;;  %s2241_s5 = inlined_call_operand.vmem [shape: bf16[32,128], index: 5, kind: input, shape index: {}]   ;;  %s2242_s6 = inlined_call_operand.vmem [shape: bf16[32,128], index: 6, kind: input, shape index: {}]   ;;  %s2243_s7 = inlined_call_operand.vmem [shape: f32[1,128], index: 7, kind: input, shape index: {}]   ;;  %s2244_s8 = inlined_call_operand.vmem [shape: bf16[32,16], index: 8, kind: input, shape index: {}]   ;;  %s2245_s9 = inlined_call_operand.vmem [shape: f32[1,16], index: 9, kind: input, shape index: {}]   ;;  %s2246_s10 = inlined_call_operand.vmem [shape: f32[1,16], index: 10, kind: input, shape index: {}]   ;;  %s2247_s11 = inlined_call_operand.vmem [shape: f32[1,16], index: 11, kind: input, shape index: {}]   ;;  %s2248_s12 = inlined_call_operand.vmem [shape: f32[1,16], index: 12, kind: input, shape index: {}]   ;;  %s2249_s13 = inlined_call_operand.vmem [shape: f32[1,16], index: 13, kind: input, shape index: {}]   ;;  %s2250_s14 = inlined_call_operand.vmem [shape: bf16[16,2], index: 14, kind: input, shape index: {}]   ;;  %s2251_s15 = inlined_call_operand.vmem [shape: f32[1,2], index: 15, kind: input, shape index: {}]   ;;  %s2252_s16 = inlined_call_operand.hbm [shape: f32[2,2], index: 16, kind: output, shape index: {}]  }
   0x1   :  { %2254 = sst [smem:[#allocation5_spill]] %s2236_s0 }
   0x2   :  { %v56_v0 = vld [vmem:[%s2238_s2] sm:$0xf]  ;;  %vm106_vm0 = vcmask 1043456   ;;  %v1847_v1 = vld [vmem:[%s2239_s3 + $0x8] sm:$0xff]  ;;  %s2255_s27 = sld [smem:[#allocation5_spill]]  ;;  %vm102_vm1 = vcmask 64512  }
   0x3   :  { %v1852_v3 = vsel %vm106_vm0, %v56_v0, 0  ;;  %v1857_v5 = vld [vmem:[%s2239_s3] sm:$0xff]  ;;  %95 = vmatpush.bf16.msra.mxu0 %v1847_v1  ;;  %v1752_v6 = vmov 0  }
   0x4   :  { %117 = vmatpush.bf16.msra.mxu1 %v1852_v3  ;;  %1583 = vset.pattern.permute.xlu2 %v1752_v6 }
   0x5   :  { %1584 = vset.pattern.permute.xlu0 %v1752_v6  ;;  %1585 = vset.pattern.permute.xlu1 %v1752_v6 }
   0x8   :  { %v71_v2 = vld [vmem:[%s2255_s27] sm:$0x3]  ;;  %279 = vmatpush.bf16.msrb.mxu1 %v1847_v1 }
   0x9   :  { %v72_v4 = vpack.c.bf16 %v71_v2, %v71_v2 }
   0xa   :  { %21 = vsyncpa [#allocation3], 0  ;;  %96 = vmatpush.bf16.msra.mxu0 %v1857_v5  ;;  %v1876_v8 = vld [vmem:[%s2240_s4] ss:$0 sm:$0xff]  ;;  %s1753_s30 = smov 32   ;;  %v1888_v34 = vld [vmem:[%s2242_s6 + $0x8] sm:$0xff] }
   0xb   :  { %1487 = vmatmul.msk.bf16.vlgmr.msra.gmra.mxu1 %vm102_vm1, %v72_v4  ;;  %v1893_v35 = vld [vmem:[%s2241_s5 + $0x8] sm:$0xff]  ;;  %183 = vmatpush.bf16.msra.mxu2 %v1888_v34  ;;  %v1899_v36 = vld [vmem:[%s2242_s6] sm:$0xff]  ;;  %vm85_vm6 = vcmask 261120   ;;  %s1755_s24 = smov [#allocation2]  }
   0xc   :  { %280 = vmatpush.bf16.msrb.mxu1 %v1857_v5  ;;  %214 = vmatpush.bf16.msra.mxu3 %v1893_v35  ;;  %v1905_v37 = vld [vmem:[%s2241_s5] sm:$0xff]  ;;  %s1754_s5 = smov 64   ;;  %s1468_s25 = sshll.u32 %s1755_s24, 4  ;;  %s1469_s25 = int_to_ptr.vmem [resolvable:$true] %s1468_s25 }
   0xd   :  { %97 = vmatmul.bf16.vlgmr.msra.gmra.mxu0 %v1752_v6  ;;  %v1507_v41 = vld [vmem:[%s2255_s27 + $0x2] sm:$0x3]  ;;  %v1931_v49 = vld [vmem:[%s2243_s7] ss:$0 sm:$0xff] }
   0xe   :  { %296 = vmatpush.bf16.msrb.mxu0 %v1852_v3  ;;  %v272_v42 = vpack.c.bf16 %v1507_v41, %v1507_v41 }
   0xf   :  { %184 = vmatpush.bf16.msra.mxu2 %v1899_v36 }
  0x10   :  { %434 = vmatpush.bf16.msra.mxu1 %v1847_v1  ;;  %215 = vmatpush.bf16.msra.mxu3 %v1905_v37 }
  0x12   :  { %451 = vmatpush.bf16.msra.mxu0 %v1852_v3  ;;  %185 = vmatmul.bf16.vlgmr.msra.gmra.mxu2 %v1752_v6 }
  0x13   :  { %353 = vmatpush.bf16.msrb.mxu2 %v1888_v34 }
  0x14   :  { %435 = vmatpush.bf16.msra.mxu1 %v1857_v5  ;;  %372 = vmatpush.bf16.msrb.mxu3 %v1893_v35 }
  0x17   :  { %354 = vmatpush.bf16.msrb.mxu2 %v1899_v36 }
  0x18   :  { %373 = vmatpush.bf16.msrb.mxu3 %v1905_v37 }
  0x1b   :  { %508 = vmatpush.bf16.msra.mxu2 %v1888_v34 }
  0x1d   :  { %1509 = vmatmul.msk.bf16.vlgmr.msrb.gmra.mxu0 %vm102_vm1, %v272_v42 }
  0x1e   :  { %606 = vmatpush.bf16.msrb.mxu0 %v1852_v3 }
  0x1f   :  { %509 = vmatpush.bf16.msra.mxu2 %v1899_v36 }
  0x88   :  { %v119_v7 = vpop.f32.mrf.mxu1 }
  0x8a   :  { %v98_v9 = vpop.f32.mrf.mxu0 }
  0x8b   :  { %v120_v10 = vadd.f32 %v119_v7, %v98_v9 }
  0x8d   :  { %v126_v11 = vadd.f32 %v1876_v8, %v120_v10 }
  0x8f   :  { %1593 = vtanh.f32 %v126_v11  ;;  %v1488_v15 = vmul.f32 -1.442695, %v126_v11 }
  0x90   :  { %v121_v12 = vpop.f32.mrf.mxu1 }
  0x91   :  { %1595 = vpow2.f32 %v1488_v15 }
  0x92   :  { %v100_v13 = vpop.f32.mrf.mxu0 }
  0x95   :  { %v1594_v14 = vpop.eup %1593  ;;  %v186_v43 = vpop.f32.mrf.mxu2 }
  0x96   :  { %149 = vrot.lane.b32.xlu0 %v1594_v14, %s1753_s30 }
  0x97   :  { %v1596_v16 = vpop.eup %1595 }
  0x98   :  { %v130_v17 = vadd.f32 1.0, %v1596_v16 }
  0x9a   :  { %1597 = vrcp.f32 %v130_v17  ;;  %v142_v23 = vand.u32 2147483648, %v130_v17  ;;  %vm136_vm3 = vweird.f32 %v130_v17  ;;  %v140_v24 = vand.u32 2147483647, %v130_v17  ;;  %v298_v46 = vpop.f32.mrf.mxu0 }
  0x9c   :  { %v143_v26 = vor.u32 1.1754944e-38, %v142_v23  ;;  %vm141_vm5 = vcmp.eq.f32.partialorder %v140_v24, 8.507059e+37 }
  0x9d   :  { %v188_v45 = vpop.f32.mrf.mxu2 }
  0xa0   :  { %v1598_v18 = vpop.eup %1597 }
  0xa1   :  { %v132_v19 = vmul.f32 %v1598_v18, %v130_v17  ;;  %vm137_vm2 = vweird.f32 %v1598_v18 }
  0xa2   :  { %vm138_vm4 = vmor %vm136_vm3, %vm137_vm2  ;;  %v300_v47 = vpop.f32.mrf.mxu0 }
  0xa3   :  { %v133_v20 = vsub.f32 1.0, %v132_v19 }
  0xa5   :  { %v134_v21 = vmul.f32 %v1598_v18, %v133_v20 }
  0xa7   :  { %v135_v22 = vadd.f32 %v1598_v18, %v134_v21 }
  0xa9   :  { %v139_v25 = vsel %vm138_vm4, %v1598_v18, %v135_v22 }
  0xaa   :  { %v144_v28 = vsel %vm141_vm5, %v143_v26, %v139_v25 }
  0xab   :  { %v147_v30 = vmul.f32 0.0, %v144_v28 }
 0x108   :  { %v150_v27 = vpop.permute.xlu0 %149 }
 0x109   :  { %v152_v29 = vmul.f32 %v150_v27, %v144_v28 }
 0x10b   :  { %154 = vrot.lane.b32.xlu0 %v152_v29, %s1753_s30 }
 0x17d   :  { %v155_v31 = vpop.permute.xlu0 %154 }
 0x17e   :  { %v1881_v32 = vadd.f32 %v155_v31, %v147_v30 }
 0x180   :  { %1599 = vtanh.f32 %v1881_v32 }
 0x186   :  { %v1600_v33 = vpop.eup %1599 }
 0x187   :  { %160 = vrot.lane.b32.xlu1 %v1600_v33, %s1753_s30 }
 0x1f9   :  { %v161_v38 = vpop.permute.xlu1 %160 }
 0x1fa   :  { %v163_v39 = vmul.f32 %v161_v38, %v144_v28 }
 0x1fc   :  { %v164_v40 = vpack.c.bf16 %v163_v39, %v163_v39 }
 0x1fe   :  { %191 = vrot.lane.b32.xlu1 %v164_v40, %s1754_s5 }
 0x270   :  { %v192_v44 = vpop.permute.xlu1 %191 }
 0x271   :  { %1505 = vmatmul.msk.bf16.vlgmr.msra.gmra.mxu3 %vm85_vm6, %v192_v44  ;;  %1508 = vmatmul.msk.bf16.vlgmr.msrb.gmra.mxu1 %vm85_vm6, %v192_v44 }
 0x272   :  { %589 = vmatpush.bf16.msrb.mxu1 %v1847_v1  ;;  %527 = vmatpush.bf16.msra.mxu3 %v1893_v35 }
 0x276   :  { %590 = vmatpush.bf16.msrb.mxu1 %v1857_v5  ;;  %528 = vmatpush.bf16.msra.mxu3 %v1905_v37 }
 0x2ee   :  { %v282_v48 = vpop.f32.mrf.mxu1 }
 0x2ef   :  { %v299_v54 = vadd.f32 %v298_v46, %v282_v48  ;;  %v1514_v48 = vld [vmem:[%s2255_s27 + $0x4] sm:$0x3] }
 0x2f1   :  { %v302_v56 = vadd.f32 %v1876_v8, %v299_v54 }
 0x2f3   :  { %v1510_v60 = vmul.f32 -1.442695, %v302_v56 }
 0x2f4   :  { %v217_v50 = vpop.f32.mrf.mxu3 }
 0x2f5   :  { %v218_v51 = vadd.f32 %v217_v50, %v186_v43  ;;  %v427_v50 = vpack.c.bf16 %v1514_v48, %v1514_v48 }
 0x2f6   :  { %v284_v52 = vpop.f32.mrf.mxu1 }
 0x2f7   :  { %v224_v53 = vadd.f32 %v1931_v49, %v218_v51  ;;  %1516 = vmatmul.msk.bf16.vlgmr.msra.gmra.mxu0 %vm102_vm1, %v427_v50 }
 0x2f8   :  { %761 = vmatpush.bf16.msra.mxu0 %v1852_v3 }
 0x2f9   :  { %1601 = vtanh.f32 %v224_v53  ;;  %v1506_v59 = vmul.f32 -1.442695, %v224_v53 }
 0x2fa   :  { %1603 = vtanh.f32 %v302_v56 }
 0x2fb   :  { %1605 = vpow2.f32 %v1506_v59 }
 0x2fc   :  { %v219_v55 = vpop.f32.mrf.mxu3  ;;  %1607 = vpow2.f32 %v1510_v60 }
 0x2ff   :  { %v1602_v57 = vpop.eup %1601 }
 0x300   :  { %247 = vrot.lane.b32.xlu2 %v1602_v57, %s1753_s30  ;;  %v1604_v58 = vpop.eup %1603 }
 0x301   :  { %v1606_v61 = vpop.eup %1605 }
 0x302   :  { %v228_v62 = vadd.f32 1.0, %v1606_v61  ;;  %v1608_v63 = vpop.eup %1607 }
 0x303   :  { %v306_v0 = vadd.f32 1.0, %v1608_v63 }
 0x304   :  { %1609 = vrcp.f32 %v228_v62  ;;  %v240_v14 = vand.u32 2147483648, %v228_v62  ;;  %vm234_vm8 = vweird.f32 %v228_v62  ;;  %v238_v15 = vand.u32 2147483647, %v228_v62 }
 0x305   :  { %1611 = vrcp.f32 %v306_v0  ;;  %v318_v23 = vand.u32 2147483648, %v306_v0  ;;  %vm312_vm12 = vweird.f32 %v306_v0  ;;  %v316_v24 = vand.u32 2147483647, %v306_v0 }
 0x306   :  { %v241_v18 = vor.u32 1.1754944e-38, %v240_v14  ;;  %vm239_vm10 = vcmp.eq.f32.partialorder %v238_v15, 8.507059e+37 }
 0x307   :  { %v319_v26 = vor.u32 1.1754944e-38, %v318_v23  ;;  %vm317_vm14 = vcmp.eq.f32.partialorder %v316_v24, 8.507059e+37 }
 0x308   :  { %325 = vrot.lane.b32.xlu2 %v1604_v58, %s1753_s30 }
 0x30a   :  { %v1610_v2 = vpop.eup %1609 }
 0x30b   :  { %v230_v4 = vmul.f32 %v1610_v2, %v228_v62  ;;  %v1612_v9 = vpop.eup %1611  ;;  %vm235_vm7 = vweird.f32 %v1610_v2 }
 0x30c   :  { %v308_v11 = vmul.f32 %v1612_v9, %v306_v0  ;;  %vm236_vm9 = vmor %vm234_vm8, %vm235_vm7  ;;  %vm313_vm11 = vweird.f32 %v1612_v9 }
 0x30d   :  { %v231_v7 = vsub.f32 1.0, %v230_v4  ;;  %vm314_vm13 = vmor %vm312_vm12, %vm313_vm11 }
 0x30e   :  { %v309_v13 = vsub.f32 1.0, %v308_v11 }
 0x30f   :  { %v232_v10 = vmul.f32 %v1610_v2, %v231_v7 }
 0x310   :  { %v310_v17 = vmul.f32 %v1612_v9, %v309_v13 }
 0x311   :  { %v233_v12 = vadd.f32 %v1610_v2, %v232_v10 }
 0x312   :  { %v311_v22 = vadd.f32 %v1612_v9, %v310_v17 }
 0x313   :  { %v237_v16 = vsel %vm236_vm9, %v1610_v2, %v233_v12 }
 0x314   :  { %v242_v20 = vsel %vm239_vm10, %v241_v18, %v237_v16  ;;  %v315_v25 = vsel %vm314_vm13, %v1612_v9, %v311_v22 }
 0x315   :  { %v320_v27 = vsel %vm317_vm14, %v319_v26, %v315_v25  ;;  %v245_v30 = vmul.f32 0.0, %v242_v20 }
 0x316   :  { %v323_v38 = vmul.f32 %v320_v27, %v1881_v32 }
 0x35a   :  { %v248_v19 = vpop.permute.xlu2 %247 }
 0x35b   :  { %v250_v21 = vmul.f32 %v248_v19, %v242_v20 }
 0x35d   :  { %252 = vrot.lane.b32.xlu0 %v250_v21, %s1753_s30 }
 0x362   :  { %v326_v28 = vpop.permute.xlu2 %325 }
 0x363   :  { %v328_v29 = vmul.f32 %v326_v28, %v320_v27 }
 0x365   :  { %330 = vrot.lane.b32.xlu1 %v328_v29, %s1753_s30 }
 0x374   :  { %v453_v53 = vpop.f32.mrf.mxu0 }
 0x37c   :  { %v455_v54 = vpop.f32.mrf.mxu0 }
 0x3cf   :  { %v253_v31 = vpop.permute.xlu0 %252 }
 0x3d0   :  { %v1939_v33 = vadd.f32 %v253_v31, %v245_v30 }
 0x3d2   :  { %1613 = vtanh.f32 %v1939_v33 }
 0x3d7   :  { %v331_v39 = vpop.permute.xlu1 %330 }
 0x3d8   :  { %v1614_v40 = vpop.eup %1613  ;;  %v1943_v41 = vadd.f32 %v331_v39, %v323_v38 }
 0x3d9   :  { %258 = vrot.lane.b32.xlu2 %v1614_v40, %s1753_s30 }
 0x3da   :  { %1615 = vtanh.f32 %v1943_v41 }
 0x3e0   :  { %v1616_v42 = vpop.eup %1615 }
 0x3e1   :  { %336 = vrot.lane.b32.xlu0 %v1616_v42, %s1753_s30 }
 0x433   :  { %v259_v43 = vpop.permute.xlu2 %258 }
 0x434   :  { %v1948_v44 = vmul.f32 %v259_v43, %v242_v20 }
 0x436   :  { %v269_v45 = vpack.c.bf16 %v1948_v44, %v1948_v44 }
 0x438   :  { %342 = vrot.lane.b32.xlu1 %v269_v45, %s1754_s5 }
 0x453   :  { %v337_v32 = vpop.permute.xlu0 %336 }
 0x454   :  { %v339_v46 = vmul.f32 %v337_v32, %v320_v27 }
 0x456   :  { %v340_v47 = vpack.c.bf16 %v339_v46, %v339_v46 }
 0x458   :  { %361 = vrot.lane.b32.xlu2 %v340_v47, %s1754_s5 }
 0x4aa   :  { %v343_v51 = vpop.permute.xlu1 %342 }
 0x4ab   :  { %1511 = vmatmul.msk.bf16.vlgmr.msrb.gmra.mxu2 %vm85_vm6, %v343_v51 }
 0x4ac   :  { %663 = vmatpush.bf16.msrb.mxu2 %v1888_v34 }
 0x4b0   :  { %664 = vmatpush.bf16.msrb.mxu2 %v1899_v36 }
 0x4b2   :  { %v362_v52 = vpop.permute.xlu2 %361 }
 0x4b3   :  { %1512 = vmatmul.msk.bf16.vlgmr.msrb.gmra.mxu3 %vm85_vm6, %v362_v52  ;;  %1515 = vmatmul.msk.bf16.vlgmr.msra.gmra.mxu1 %vm85_vm6, %v362_v52 }
 0x4b4   :  { %682 = vmatpush.bf16.msrb.mxu3 %v1893_v35  ;;  %744 = vmatpush.bf16.msra.mxu1 %v1847_v1 }
 0x4b8   :  { %683 = vmatpush.bf16.msrb.mxu3 %v1905_v37  ;;  %745 = vmatpush.bf16.msra.mxu1 %v1857_v5 }
 0x52e   :  { %v356_v55 = vpop.f32.mrf.mxu2 }
 0x530   :  { %v437_v56 = vpop.f32.mrf.mxu1 }
 0x531   :  { %v454_v57 = vadd.f32 %v453_v53, %v437_v56 }
 0x533   :  { %v457_v58 = vadd.f32 %v1876_v8, %v454_v57 }
 0x535   :  { %1617 = vtanh.f32 %v457_v58  ;;  %v1517_v7 = vmul.f32 -1.442695, %v457_v58 }
 0x536   :  { %v358_v59 = vpop.f32.mrf.mxu2  ;;  %v375_v60 = vpop.f32.mrf.mxu3 }
 0x537   :  { %v376_v61 = vadd.f32 %v375_v60, %v356_v55 }
 0x538   :  { %v439_v62 = vpop.f32.mrf.mxu1 }
 0x539   :  { %v379_v63 = vadd.f32 %v1931_v49, %v376_v61 }
 0x53b   :  { %v1618_v0 = vpop.eup %1617  ;;  %1619 = vtanh.f32 %v379_v63  ;;  %v1513_v9 = vmul.f32 -1.442695, %v379_v63 }
 0x53c   :  { %480 = vrot.lane.b32.xlu1 %v1618_v0, %s1753_s30  ;;  %1621 = vpow2.f32 %v1517_v7 }
 0x53d   :  { %1623 = vpow2.f32 %v1513_v9 }
 0x53e   :  { %v377_v2 = vpop.f32.mrf.mxu3 }
 0x541   :  { %v1620_v4 = vpop.eup %1619 }
 0x542   :  { %402 = vrot.lane.b32.xlu0 %v1620_v4, %s1753_s30  ;;  %v1622_v10 = vpop.eup %1621 }
 0x543   :  { %v461_v11 = vadd.f32 1.0, %v1622_v10  ;;  %v1624_v12 = vpop.eup %1623 }
 0x544   :  { %v383_v13 = vadd.f32 1.0, %v1624_v12 }
 0x545   :  { %1625 = vrcp.f32 %v461_v11  ;;  %v473_v22 = vand.u32 2147483648, %v461_v11  ;;  %vm467_vm0 = vweird.f32 %v461_v11  ;;  %v471_v23 = vand.u32 2147483647, %v461_v11 }
 0x546   :  { %1627 = vrcp.f32 %v383_v13  ;;  %v395_v30 = vand.u32 2147483648, %v383_v13  ;;  %vm389_vm5 = vweird.f32 %v383_v13  ;;  %v393_v38 = vand.u32 2147483647, %v383_v13 }
 0x547   :  { %v474_v26 = vor.u32 1.1754944e-38, %v473_v22  ;;  %vm472_vm3 = vcmp.eq.f32.partialorder %v471_v23, 8.507059e+37 }
 0x548   :  { %v396_v40 = vor.u32 1.1754944e-38, %v395_v30  ;;  %vm394_vm8 = vcmp.eq.f32.partialorder %v393_v38, 8.507059e+37 }
 0x54b   :  { %v1626_v14 = vpop.eup %1625 }
 0x54c   :  { %v463_v15 = vmul.f32 %v1626_v14, %v461_v11  ;;  %v1628_v16 = vpop.eup %1627  ;;  %vm468_vm15 = vweird.f32 %v1626_v14 }
 0x54d   :  { %v385_v18 = vmul.f32 %v1628_v16, %v383_v13  ;;  %vm469_vm2 = vmor %vm467_vm0, %vm468_vm15  ;;  %vm390_vm4 = vweird.f32 %v1628_v16 }
 0x54e   :  { %v464_v17 = vsub.f32 1.0, %v463_v15  ;;  %vm391_vm7 = vmor %vm389_vm5, %vm390_vm4 }
 0x54f   :  { %v386_v20 = vsub.f32 1.0, %v385_v18 }
 0x550   :  { %v465_v19 = vmul.f32 %v1626_v14, %v464_v17 }
 0x551   :  { %v387_v24 = vmul.f32 %v1628_v16, %v386_v20 }
 0x552   :  { %v466_v21 = vadd.f32 %v1626_v14, %v465_v19 }
 0x553   :  { %v388_v27 = vadd.f32 %v1628_v16, %v387_v24 }
 0x554   :  { %v470_v25 = vsel %vm469_vm2, %v1626_v14, %v466_v21 }
 0x555   :  { %v475_v29 = vsel %vm472_vm3, %v474_v26, %v470_v25  ;;  %v392_v39 = vsel %vm391_vm7, %v1628_v16, %v388_v27 }
 0x556   :  { %v397_v43 = vsel %vm394_vm8, %v396_v40, %v392_v39  ;;  %v478_v50 = vmul.f32 %v475_v29, %v1943_v41 }
 0x557   :  { %v400_v32 = vmul.f32 %v397_v43, %v1939_v33  ;;  %v1521_v33 = vld [vmem:[%s2255_s27 + $0x6] sm:$0x3] }
 0x558   :  { %v582_v54 = vpack.c.bf16 %v1521_v33, %v1521_v33 }
 0x55a   :  { %1523 = vmatmul.msk.bf16.vlgmr.msrb.gmra.mxu0 %vm102_vm1, %v582_v54 }
 0x55b   :  { %916 = vmatpush.bf16.msrb.mxu0 %v1852_v3 }
 0x5ae   :  { %v481_v28 = vpop.permute.xlu1 %480 }
 0x5af   :  { %v483_v31 = vmul.f32 %v481_v28, %v475_v29 }
 0x5b1   :  { %485 = vrot.lane.b32.xlu0 %v483_v31, %s1753_s30 }
 0x5b4   :  { %v403_v42 = vpop.permute.xlu0 %402 }
 0x5b5   :  { %v405_v45 = vmul.f32 %v403_v42, %v397_v43 }
 0x5b7   :  { %407 = vrot.lane.b32.xlu2 %v405_v45, %s1753_s30 }
 0x5d7   :  { %v608_v60 = vpop.f32.mrf.mxu0 }
 0x5df   :  { %v610_v61 = vpop.f32.mrf.mxu0 }
 0x611   :  { %v408_v46 = vpop.permute.xlu2 %407 }
 0x612   :  { %v1975_v47 = vadd.f32 %v408_v46, %v400_v32 }
 0x614   :  { %1629 = vtanh.f32 %v1975_v47 }
 0x61a   :  { %v1630_v48 = vpop.eup %1629 }
 0x61b   :  { %413 = vrot.lane.b32.xlu1 %v1630_v48, %s1753_s30 }
 0x623   :  { %v486_v51 = vpop.permute.xlu0 %485 }
 0x624   :  { %v1980_v52 = vadd.f32 %v486_v51, %v478_v50 }
 0x626   :  { %1631 = vtanh.f32 %v1980_v52 }
 0x62c   :  { %v1632_v53 = vpop.eup %1631 }
 0x62d   :  { %491 = vrot.lane.b32.xlu2 %v1632_v53, %s1753_s30 }
 0x687   :  { %v492_v55 = vpop.permute.xlu2 %491 }
 0x688   :  { %v494_v56 = vmul.f32 %v492_v55, %v475_v29 }
 0x68a   :  { %v495_v41 = vpack.c.bf16 %v494_v56, %v494_v56 }
 0x68c   :  { %516 = vrot.lane.b32.xlu1 %v495_v41, %s1754_s5 }
 0x68d   :  { %v414_v57 = vpop.permute.xlu1 %413 }
 0x68e   :  { %v1990_v58 = vmul.f32 %v414_v57, %v397_v43 }
 0x690   :  { %v424_v59 = vpack.c.bf16 %v1990_v58, %v1990_v58 }
 0x692   :  { %497 = vrot.lane.b32.xlu0 %v424_v59, %s1754_s5 }
 0x6fe   :  { %v517_v62 = vpop.permute.xlu1 %516 }
 0x6ff   :  { %1519 = vmatmul.msk.bf16.vlgmr.msra.gmra.mxu3 %vm85_vm6, %v517_v62  ;;  %1522 = vmatmul.msk.bf16.vlgmr.msrb.gmra.mxu1 %vm85_vm6, %v517_v62 }
 0x700   :  { %837 = vmatpush.bf16.msra.mxu3 %v1893_v35  ;;  %899 = vmatpush.bf16.msrb.mxu1 %v1847_v1 }
 0x704   :  { %v498_v63 = vpop.permute.xlu0 %497  ;;  %838 = vmatpush.bf16.msra.mxu3 %v1905_v37  ;;  %900 = vmatpush.bf16.msrb.mxu1 %v1857_v5 }
 0x705   :  { %1518 = vmatmul.msk.bf16.vlgmr.msra.gmra.mxu2 %vm85_vm6, %v498_v63 }
 0x706   :  { %818 = vmatpush.bf16.msra.mxu2 %v1888_v34 }
 0x70a   :  { %819 = vmatpush.bf16.msra.mxu2 %v1899_v36 }
 0x77c   :  { %v592_v0 = vpop.f32.mrf.mxu1 }
 0x77d   :  { %v609_v2 = vadd.f32 %v608_v60, %v592_v0 }
 0x77f   :  { %v612_v4 = vadd.f32 %v1876_v8, %v609_v2 }
 0x781   :  { %1633 = vtanh.f32 %v612_v4  ;;  %v1524_v19 = vmul.f32 -1.442695, %v612_v4 }
 0x782   :  { %v530_v7 = vpop.f32.mrf.mxu3 }
 0x784   :  { %v594_v9 = vpop.f32.mrf.mxu1 }
 0x787   :  { %v1634_v10 = vpop.eup %1633 }
 0x788   :  { %v511_v11 = vpop.f32.mrf.mxu2  ;;  %635 = vrot.lane.b32.xlu0 %v1634_v10, %s1753_s30 }
 0x789   :  { %v531_v12 = vadd.f32 %v530_v7, %v511_v11 }
 0x78a   :  { %v532_v13 = vpop.f32.mrf.mxu3 }
 0x78b   :  { %v534_v14 = vadd.f32 %v1931_v49, %v531_v12 }
 0x78d   :  { %1635 = vtanh.f32 %v534_v14  ;;  %v1520_v17 = vmul.f32 -1.442695, %v534_v14 }
 0x78f   :  { %1637 = vpow2.f32 %v1520_v17 }
 0x790   :  { %v513_v15 = vpop.f32.mrf.mxu2  ;;  %1639 = vpow2.f32 %v1524_v19 }
 0x793   :  { %v1636_v16 = vpop.eup %1635 }
 0x794   :  { %557 = vrot.lane.b32.xlu2 %v1636_v16, %s1753_s30 }
 0x795   :  { %v1638_v18 = vpop.eup %1637 }
 0x796   :  { %v538_v20 = vadd.f32 1.0, %v1638_v18  ;;  %v1640_v21 = vpop.eup %1639 }
 0x797   :  { %v616_v23 = vadd.f32 1.0, %v1640_v21 }
 0x798   :  { %1641 = vrcp.f32 %v538_v20  ;;  %v550_v30 = vand.u32 2147483648, %v538_v20  ;;  %vm544_vm10 = vweird.f32 %v538_v20  ;;  %v548_v31 = vand.u32 2147483647, %v538_v20 }
 0x799   :  { %1643 = vrcp.f32 %v616_v23  ;;  %v628_v48 = vand.u32 2147483648, %v616_v23  ;;  %vm622_vm14 = vweird.f32 %v616_v23  ;;  %v626_v50 = vand.u32 2147483647, %v616_v23 }
 0x79a   :  { %v551_v40 = vor.u32 1.1754944e-38, %v550_v30  ;;  %vm549_vm12 = vcmp.eq.f32.partialorder %v548_v31, 8.507059e+37 }
 0x79b   :  { %v629_v53 = vor.u32 1.1754944e-38, %v628_v48  ;;  %vm627_vm0 = vcmp.eq.f32.partialorder %v626_v50, 8.507059e+37 }
 0x79e   :  { %v1642_v22 = vpop.eup %1641 }
 0x79f   :  { %v540_v24 = vmul.f32 %v1642_v22, %v538_v20  ;;  %v1644_v27 = vpop.eup %1643  ;;  %vm545_vm9 = vweird.f32 %v1642_v22 }
 0x7a0   :  { %v618_v29 = vmul.f32 %v1644_v27, %v616_v23  ;;  %vm546_vm11 = vmor %vm544_vm10, %vm545_vm9  ;;  %vm623_vm13 = vweird.f32 %v1644_v27 }
 0x7a1   :  { %v541_v25 = vsub.f32 1.0, %v540_v24  ;;  %vm624_vm15 = vmor %vm622_vm14, %vm623_vm13 }
 0x7a2   :  { %v619_v39 = vsub.f32 1.0, %v618_v29 }
 0x7a3   :  { %v542_v26 = vmul.f32 %v1642_v22, %v541_v25 }
 0x7a4   :  { %v620_v32 = vmul.f32 %v1644_v27, %v619_v39 }
 0x7a5   :  { %v543_v28 = vadd.f32 %v1642_v22, %v542_v26 }
 0x7a6   :  { %v621_v46 = vadd.f32 %v1644_v27, %v620_v32 }
 0x7a7   :  { %v547_v38 = vsel %vm546_vm11, %v1642_v22, %v543_v28 }
 0x7a8   :  { %v552_v43 = vsel %vm549_vm12, %v551_v40, %v547_v38  ;;  %v625_v51 = vsel %vm624_vm15, %v1644_v27, %v621_v46 }
 0x7a9   :  { %v630_v54 = vsel %vm627_vm0, %v629_v53, %v625_v51  ;;  %v555_v60 = vmul.f32 %v552_v43, %v1975_v47  ;;  %v1528_v47 = vld [vmem:[%s2255_s27 + $0x8] sm:$0x3] }
 0x7aa   :  { %v633_v56 = vmul.f32 %v630_v54, %v1980_v52  ;;  %v737_v10 = vpack.c.bf16 %v1528_v47, %v1528_v47 }
 0x7ac   :  { %1530 = vmatmul.msk.bf16.vlgmr.msra.gmra.mxu0 %vm102_vm1, %v737_v10 }
 0x7ad   :  { %1071 = vmatpush.bf16.msra.mxu0 %v1852_v3 }
 0x7ee   :  { %v558_v42 = vpop.permute.xlu2 %557 }
 0x7ef   :  { %v560_v45 = vmul.f32 %v558_v42, %v552_v43 }
 0x7f1   :  { %562 = vrot.lane.b32.xlu1 %v560_v45, %s1753_s30 }
 0x7fa   :  { %v636_v33 = vpop.permute.xlu0 %635 }
 0x7fb   :  { %v638_v55 = vmul.f32 %v636_v33, %v630_v54 }
 0x7fd   :  { %640 = vrot.lane.b32.xlu2 %v638_v55, %s1753_s30 }
 0x829   :  { %v763_v13 = vpop.f32.mrf.mxu0 }
 0x831   :  { %v765_v14 = vpop.f32.mrf.mxu0 }
 0x857   :  { %v641_v41 = vpop.permute.xlu2 %640 }
 0x858   :  { %v2011_v57 = vadd.f32 %v641_v41, %v633_v56 }
 0x85a   :  { %1645 = vtanh.f32 %v2011_v57 }
 0x860   :  { %v1646_v59 = vpop.eup %1645 }
 0x861   :  { %646 = vrot.lane.b32.xlu1 %v1646_v59, %s1753_s30 }
 0x863   :  { %v563_v61 = vpop.permute.xlu1 %562 }
 0x864   :  { %v2016_v62 = vadd.f32 %v563_v61, %v555_v60 }
 0x866   :  { %1647 = vtanh.f32 %v2016_v62 }
 0x86c   :  { %v1648_v63 = vpop.eup %1647 }
 0x86d   :  { %568 = vrot.lane.b32.xlu0 %v1648_v63, %s1753_s30 }
 0x8d3   :  { %v647_v0 = vpop.permute.xlu1 %646 }
 0x8d4   :  { %v649_v52 = vmul.f32 %v647_v0, %v630_v54 }
 0x8d6   :  { %v650_v2 = vpack.c.bf16 %v649_v52, %v649_v52 }
 0x8d8   :  { %671 = vrot.lane.b32.xlu0 %v650_v2, %s1754_s5 }
 0x8df   :  { %v569_v4 = vpop.permute.xlu0 %568 }
 0x8e0   :  { %v2021_v7 = vmul.f32 %v569_v4, %v552_v43 }
 0x8e2   :  { %v579_v9 = vpack.c.bf16 %v2021_v7, %v2021_v7 }
 0x8e4   :  { %652 = vrot.lane.b32.xlu2 %v579_v9, %s1754_s5 }
 0x93e   :  { %v653_v11 = vpop.permute.xlu2 %652 }
 0x93f   :  { %1525 = vmatmul.msk.bf16.vlgmr.msrb.gmra.mxu2 %vm85_vm6, %v653_v11 }
 0x940   :  { %973 = vmatpush.bf16.msrb.mxu2 %v1888_v34 }
 0x944   :  { %974 = vmatpush.bf16.msrb.mxu2 %v1899_v36 }
 0x94a   :  { %v672_v12 = vpop.permute.xlu0 %671 }
 0x94b   :  { %1526 = vmatmul.msk.bf16.vlgmr.msrb.gmra.mxu3 %vm85_vm6, %v672_v12  ;;  %1529 = vmatmul.msk.bf16.vlgmr.msra.gmra.mxu1 %vm85_vm6, %v672_v12 }
 0x94c   :  { %992 = vmatpush.bf16.msrb.mxu3 %v1893_v35  ;;  %1054 = vmatpush.bf16.msra.mxu1 %v1847_v1 }
 0x950   :  { %993 = vmatpush.bf16.msrb.mxu3 %v1905_v37  ;;  %1055 = vmatpush.bf16.msra.mxu1 %v1857_v5 }
 0x9c2   :  { %v666_v15 = vpop.f32.mrf.mxu2 }
 0x9c8   :  { %v747_v16 = vpop.f32.mrf.mxu1 }
 0x9c9   :  { %v764_v17 = vadd.f32 %v763_v13, %v747_v16 }
 0x9ca   :  { %v668_v18 = vpop.f32.mrf.mxu2 }
 0x9cb   :  { %v767_v19 = vadd.f32 %v1876_v8, %v764_v17 }
 0x9cd   :  { %1649 = vtanh.f32 %v767_v19  ;;  %v1531_v27 = vmul.f32 -1.442695, %v767_v19 }
 0x9ce   :  { %v685_v20 = vpop.f32.mrf.mxu3 }
 0x9cf   :  { %v686_v21 = vadd.f32 %v685_v20, %v666_v15 }
 0x9d0   :  { %v749_v22 = vpop.f32.mrf.mxu1 }
 0x9d1   :  { %v689_v23 = vadd.f32 %v1931_v49, %v686_v21 }
 0x9d3   :  { %v1650_v24 = vpop.eup %1649  ;;  %1651 = vtanh.f32 %v689_v23  ;;  %v1527_v38 = vmul.f32 -1.442695, %v689_v23 }
 0x9d4   :  { %790 = vrot.lane.b32.xlu2 %v1650_v24, %s1753_s30  ;;  %1653 = vpow2.f32 %v1531_v27 }
 0x9d6   :  { %v687_v25 = vpop.f32.mrf.mxu3 }
 0x9d9   :  { %v1652_v26 = vpop.eup %1651 }
 0x9da   :  { %712 = vrot.lane.b32.xlu1 %v1652_v26, %s1753_s30  ;;  %v1654_v28 = vpop.eup %1653 }
 0x9db   :  { %v771_v29 = vadd.f32 1.0, %v1654_v28 }
 0x9dd   :  { %1655 = vrcp.f32 %v771_v29  ;;  %v783_v43 = vand.u32 2147483648, %v771_v29  ;;  %vm777_vm3 = vweird.f32 %v771_v29  ;;  %v781_v32 = vand.u32 2147483647, %v771_v29 }
 0x9de   :  { %1657 = vpow2.f32 %v1527_v38 }
 0x9df   :  { %v784_v50 = vor.u32 1.1754944e-38, %v783_v43  ;;  %vm782_vm5 = vcmp.eq.f32.partialorder %v781_v32, 8.507059e+37 }
 0x9e3   :  { %v1656_v30 = vpop.eup %1655 }
 0x9e4   :  { %v773_v31 = vmul.f32 %v1656_v30, %v771_v29  ;;  %vm778_vm2 = vweird.f32 %v1656_v30  ;;  %v1658_v45 = vpop.eup %1657 }
 0x9e5   :  { %vm779_vm4 = vmor %vm777_vm3, %vm778_vm2  ;;  %v693_v48 = vadd.f32 1.0, %v1658_v45 }
 0x9e6   :  { %v774_v39 = vsub.f32 1.0, %v773_v31 }
 0x9e7   :  { %1659 = vrcp.f32 %v693_v48  ;;  %v705_v60 = vand.u32 2147483648, %v693_v48  ;;  %vm699_vm8 = vweird.f32 %v693_v48  ;;  %v703_v61 = vand.u32 2147483647, %v693_v48 }
 0x9e8   :  { %v775_v40 = vmul.f32 %v1656_v30, %v774_v39 }
 0x9e9   :  { %v706_v0 = vor.u32 1.1754944e-38, %v705_v60  ;;  %vm704_vm10 = vcmp.eq.f32.partialorder %v703_v61, 8.507059e+37 }
 0x9ea   :  { %v776_v42 = vadd.f32 %v1656_v30, %v775_v40 }
 0x9ec   :  { %v780_v46 = vsel %vm779_vm4, %v1656_v30, %v776_v42 }
 0x9ed   :  { %v785_v53 = vsel %vm782_vm5, %v784_v50, %v780_v46  ;;  %v1660_v54 = vpop.eup %1659 }
 0x9ee   :  { %v695_v55 = vmul.f32 %v1660_v54, %v693_v48  ;;  %vm700_vm7 = vweird.f32 %v1660_v54  ;;  %v788_v9 = vmul.f32 %v785_v53, %v2011_v57 }
 0x9ef   :  { %vm701_vm9 = vmor %vm699_vm8, %vm700_vm7 }
 0x9f0   :  { %v696_v56 = vsub.f32 1.0, %v695_v55 }
 0x9f2   :  { %v697_v41 = vmul.f32 %v1660_v54, %v696_v56 }
 0x9f4   :  { %v698_v59 = vadd.f32 %v1660_v54, %v697_v41 }
 0x9f6   :  { %v702_v63 = vsel %vm701_vm9, %v1660_v54, %v698_v59 }
 0x9f7   :  { %v707_v2 = vsel %vm704_vm10, %v706_v0, %v702_v63 }
 0x9f8   :  { %v710_v12 = vmul.f32 %v707_v2, %v2016_v62  ;;  %v1535_v62 = vld [vmem:[%s2255_s27 + $0xa] sm:$0x3] }
 0x9f9   :  { %v892_v21 = vpack.c.bf16 %v1535_v62, %v1535_v62 }
 0x9fb   :  { %1537 = vmatmul.msk.bf16.vlgmr.msrb.gmra.mxu0 %vm102_vm1, %v892_v21 }
 0x9fc   :  { %1226 = vmatpush.bf16.msrb.mxu0 %v1852_v3 }
 0xa2e   :  { %v791_v51 = vpop.permute.xlu2 %790 }
 0xa2f   :  { %v793_v33 = vmul.f32 %v791_v51, %v785_v53 }
 0xa31   :  { %795 = vrot.lane.b32.xlu1 %v793_v33, %s1753_s30 }
 0xa4c   :  { %v713_v52 = vpop.permute.xlu1 %712 }
 0xa4d   :  { %v715_v4 = vmul.f32 %v713_v52, %v707_v2 }
 0xa4f   :  { %717 = vrot.lane.b32.xlu0 %v715_v4, %s1753_s30 }
 0xa78   :  { %v918_v3 = vpop.f32.mrf.mxu0 }
 0xa80   :  { %v920_v24 = vpop.f32.mrf.mxu0 }
 0xaa3   :  { %v796_v47 = vpop.permute.xlu1 %795 }
 0xaa4   :  { %v2047_v10 = vadd.f32 %v796_v47, %v788_v9 }
 0xaa6   :  { %1661 = vtanh.f32 %v2047_v10 }
 0xaac   :  { %v1662_v11 = vpop.eup %1661 }
 0xaad   :  { %801 = vrot.lane.b32.xlu0 %v1662_v11, %s1753_s30 }
 0xac1   :  { %v718_v13 = vpop.permute.xlu0 %717 }
 0xac2   :  { %v2052_v14 = vadd.f32 %v718_v13, %v710_v12 }
 0xac4   :  { %1663 = vtanh.f32 %v2052_v14 }
 0xaca   :  { %v1664_v15 = vpop.eup %1663 }
 0xacb   :  { %723 = vrot.lane.b32.xlu2 %v1664_v15, %s1753_s30 }
 0xb1f   :  { %v802_v16 = vpop.permute.xlu0 %801 }
 0xb20   :  { %v804_v57 = vmul.f32 %v802_v16, %v785_v53 }
 0xb22   :  { %v805_v17 = vpack.c.bf16 %v804_v57, %v804_v57 }
 0xb24   :  { %826 = vrot.lane.b32.xlu2 %v805_v17, %s1754_s5 }
 0xb25   :  { %v724_v18 = vpop.permute.xlu2 %723 }
 0xb26   :  { %v2057_v19 = vmul.f32 %v724_v18, %v707_v2 }
 0xb28   :  { %v734_v20 = vpack.c.bf16 %v2057_v19, %v2057_v19 }
 0xb2a   :  { %807 = vrot.lane.b32.xlu1 %v734_v20, %s1754_s5 }
 0xb7e   :  { %v827_v22 = vpop.permute.xlu2 %826 }
 0xb7f   :  { %1533 = vmatmul.msk.bf16.vlgmr.msra.gmra.mxu3 %vm85_vm6, %v827_v22  ;;  %1536 = vmatmul.msk.bf16.vlgmr.msrb.gmra.mxu1 %vm85_vm6, %v827_v22 }
 0xb80   :  { %1147 = vmatpush.bf16.msra.mxu3 %v1893_v35  ;;  %1209 = vmatpush.bf16.msrb.mxu1 %v1847_v1 }
 0xb84   :  { %1148 = vmatpush.bf16.msra.mxu3 %v1905_v37  ;;  %1210 = vmatpush.bf16.msrb.mxu1 %v1857_v5 }
 0xb9c   :  { %v808_v23 = vpop.permute.xlu1 %807 }
 0xb9d   :  { %1532 = vmatmul.msk.bf16.vlgmr.msra.gmra.mxu2 %vm85_vm6, %v808_v23 }
 0xb9e   :  { %1128 = vmatpush.bf16.msra.mxu2 %v1888_v34 }
 0xba2   :  { %1129 = vmatpush.bf16.msra.mxu2 %v1899_v36 }
 0xbfc   :  { %v902_v25 = vpop.f32.mrf.mxu1 }
 0xbfd   :  { %v919_v26 = vadd.f32 %v918_v3, %v902_v25 }
 0xbff   :  { %v922_v27 = vadd.f32 %v1876_v8, %v919_v26 }
 0xc01   :  { %1665 = vtanh.f32 %v922_v27  ;;  %v1538_v40 = vmul.f32 -1.442695, %v922_v27 }
 0xc02   :  { %v840_v28 = vpop.f32.mrf.mxu3 }
 0xc04   :  { %v904_v1 = vpop.f32.mrf.mxu1 }
 0xc07   :  { %v1666_v29 = vpop.eup %1665 }
 0xc08   :  { %945 = vrot.lane.b32.xlu1 %v1666_v29, %s1753_s30  ;;  %v1723_v29 = vld [vmem:[%s2242_s6 + $0x8] sm:$0xff] }
 0xc0a   :  { %v842_v5 = vpop.f32.mrf.mxu3 }
 0xc20   :  { %v821_v30 = vpop.f32.mrf.mxu2 }
 0xc21   :  { %v841_v31 = vadd.f32 %v840_v28, %v821_v30 }
 0xc23   :  { %v844_v38 = vadd.f32 %v1931_v49, %v841_v31 }
 0xc25   :  { %1667 = vtanh.f32 %v844_v38  ;;  %v1534_v48 = vmul.f32 -1.442695, %v844_v38 }
 0xc26   :  { %1669 = vpow2.f32 %v1538_v40 }
 0xc28   :  { %v823_v34 = vpop.f32.mrf.mxu2 }
 0xc2b   :  { %v1668_v39 = vpop.eup %1667 }
 0xc2c   :  { %867 = vrot.lane.b32.xlu0 %v1668_v39, %s1753_s30  ;;  %v1670_v42 = vpop.eup %1669 }
 0xc2d   :  { %v926_v8 = vadd.f32 1.0, %v1670_v42 }
 0xc2f   :  { %1671 = vrcp.f32 %v926_v8  ;;  %v938_v51 = vand.u32 2147483648, %v926_v8  ;;  %vm932_vm12 = vweird.f32 %v926_v8  ;;  %v936_v53 = vand.u32 2147483647, %v926_v8 }
 0xc30   :  { %1673 = vpow2.f32 %v1534_v48 }
 0xc31   :  { %v939_v54 = vor.u32 1.1754944e-38, %v938_v51  ;;  %vm937_vm14 = vcmp.eq.f32.partialorder %v936_v53, 8.507059e+37 }
 0xc35   :  { %v1672_v43 = vpop.eup %1671 }
 0xc36   :  { %v928_v45 = vmul.f32 %v1672_v43, %v926_v8  ;;  %vm933_vm11 = vweird.f32 %v1672_v43  ;;  %v1674_v41 = vpop.eup %1673 }
 0xc37   :  { %vm934_vm13 = vmor %vm932_vm12, %vm933_vm11  ;;  %v848_v60 = vadd.f32 1.0, %v1674_v41 }
 0xc38   :  { %v929_v32 = vsub.f32 1.0, %v928_v45 }
 0xc39   :  { %1675 = vrcp.f32 %v848_v60  ;;  %v860_v4 = vand.u32 2147483648, %v848_v60  ;;  %vm854_vm0 = vweird.f32 %v848_v60  ;;  %v858_v9 = vand.u32 2147483647, %v848_v60 }
 0xc3a   :  { %v930_v46 = vmul.f32 %v1672_v43, %v929_v32 }
 0xc3b   :  { %v861_v11 = vor.u32 1.1754944e-38, %v860_v4  ;;  %vm859_vm3 = vcmp.eq.f32.partialorder %v858_v9, 8.507059e+37 }
 0xc3c   :  { %v931_v50 = vadd.f32 %v1672_v43, %v930_v46 }
 0xc3e   :  { %v935_v33 = vsel %vm934_vm13, %v1672_v43, %v931_v50 }
 0xc3f   :  { %v940_v56 = vsel %vm937_vm14, %v939_v54, %v935_v33  ;;  %v1676_v61 = vpop.eup %1675 }
 0xc40   :  { %v850_v63 = vmul.f32 %v1676_v61, %v848_v60  ;;  %vm855_vm15 = vweird.f32 %v1676_v61  ;;  %v943_v16 = vmul.f32 %v940_v56, %v2047_v10 }
 0xc41   :  { %vm856_vm2 = vmor %vm854_vm0, %vm855_vm15 }
 0xc42   :  { %v851_v0 = vsub.f32 1.0, %v850_v63 }
 0xc44   :  { %v852_v52 = vmul.f32 %v1676_v61, %v851_v0 }
 0xc46   :  { %v853_v2 = vadd.f32 %v1676_v61, %v852_v52 }
 0xc48   :  { %v857_v47 = vsel %vm856_vm2, %v1676_v61, %v853_v2 }
 0xc49   :  { %v862_v13 = vsel %vm859_vm3, %v861_v11, %v857_v47 }
 0xc4a   :  { %v865_v20 = vmul.f32 %v862_v13, %v2052_v14  ;;  %v1542_v14 = vld [vmem:[%s2255_s27 + $0xc] sm:$0x3] }
 0xc4b   :  { %v1047_v27 = vpack.c.bf16 %v1542_v14, %v1542_v14 }
 0xc4d   :  { %1544 = vmatmul.msk.bf16.vlgmr.msra.gmra.mxu0 %vm102_vm1, %v1047_v27 }
 0xc7a   :  { %v946_v55 = vpop.permute.xlu1 %945 }
 0xc7b   :  { %v948_v59 = vmul.f32 %v946_v55, %v940_v56 }
 0xc7d   :  { %950 = vrot.lane.b32.xlu0 %v948_v59, %s1753_s30 }
 0xc9e   :  { %v868_v12 = vpop.permute.xlu0 %867 }
 0xc9f   :  { %v870_v15 = vmul.f32 %v868_v12, %v862_v13 }
 0xca1   :  { %872 = vrot.lane.b32.xlu2 %v870_v15, %s1753_s30 }
 0xcca   :  { %v1073_v5 = vpop.f32.mrf.mxu0 }
 0xcd2   :  { %v1075_v30 = vpop.f32.mrf.mxu0 }
 0xcef   :  { %v951_v57 = vpop.permute.xlu0 %950 }
 0xcf0   :  { %v2083_v17 = vadd.f32 %v951_v57, %v943_v16 }
 0xcf2   :  { %1677 = vtanh.f32 %v2083_v17 }
 0xcf8   :  { %v1678_v18 = vpop.eup %1677 }
 0xcf9   :  { %956 = vrot.lane.b32.xlu2 %v1678_v18, %s1753_s30 }
 0xcfb   :  { %v873_v62 = vpop.permute.xlu2 %872 }
 0xcfc   :  { %v2088_v21 = vadd.f32 %v873_v62, %v865_v20 }
 0xcfe   :  { %1679 = vtanh.f32 %v2088_v21 }
 0xd04   :  { %v1680_v22 = vpop.eup %1679 }
 0xd05   :  { %878 = vrot.lane.b32.xlu1 %v1680_v22, %s1753_s30 }
 0xd53   :  { %v957_v23 = vpop.permute.xlu2 %956 }
 0xd54   :  { %v959_v10 = vmul.f32 %v957_v23, %v940_v56 }
 0xd56   :  { %v960_v3 = vpack.c.bf16 %v959_v10, %v959_v10 }
 0xd58   :  { %981 = vrot.lane.b32.xlu1 %v960_v3, %s1754_s5 }
 0xd77   :  { %v879_v24 = vpop.permute.xlu1 %878 }
 0xd78   :  { %v2093_v25 = vmul.f32 %v879_v24, %v862_v13 }
 0xd7a   :  { %v889_v26 = vpack.c.bf16 %v2093_v25, %v2093_v25 }
 0xd7c   :  { %962 = vrot.lane.b32.xlu0 %v889_v26, %s1754_s5 }
 0xdca   :  { %v982_v28 = vpop.permute.xlu1 %981 }
 0xdcb   :  { %1540 = vmatmul.msk.bf16.vlgmr.msrb.gmra.mxu3 %vm85_vm6, %v982_v28  ;;  %1543 = vmatmul.msk.bf16.vlgmr.msra.gmra.mxu1 %vm85_vm6, %v982_v28 }
 0xdcc   :  { %1302 = vmatpush.bf16.msrb.mxu3 %v1893_v35  ;;  %v2114_v35 = vld [vmem:[%s2240_s4] ss:$0 sm:$0xff] }
 0xdd0   :  { %1303 = vmatpush.bf16.msrb.mxu3 %v1905_v37 }
 0xdee   :  { %v963_v1 = vpop.permute.xlu0 %962 }
 0xdef   :  { %1539 = vmatmul.msk.bf16.vlgmr.msrb.gmra.mxu2 %vm85_vm6, %v963_v1 }
 0xdf0   :  { %1283 = vmatpush.bf16.msrb.mxu2 %v1723_v29 }
 0xdf4   :  { %1284 = vmatpush.bf16.msrb.mxu2 %v1899_v36 }
 0xe48   :  { %v1057_v31 = vpop.f32.mrf.mxu1 }
 0xe49   :  { %v1074_v38 = vadd.f32 %v1073_v5, %v1057_v31 }
 0xe4b   :  { %v1077_v37 = vadd.f32 %v2114_v35, %v1074_v38 }
 0xe4d   :  { %1681 = vtanh.f32 %v1077_v37  ;;  %v1545_v46 = vmul.f32 -1.442695, %v1077_v37 }
 0xe4e   :  { %v995_v34 = vpop.f32.mrf.mxu3 }
 0xe50   :  { %v1059_v39 = vpop.f32.mrf.mxu1 }
 0xe53   :  { %v1682_v40 = vpop.eup %1681 }
 0xe54   :  { %1100 = vrot.lane.b32.xlu0 %v1682_v40, %s1753_s30 }
 0xe56   :  { %v997_v42 = vpop.f32.mrf.mxu3 }
 0xe72   :  { %v976_v8 = vpop.f32.mrf.mxu2 }
 0xe73   :  { %v996_v36 = vadd.f32 %v995_v34, %v976_v8 }
 0xe75   :  { %v999_v43 = vadd.f32 %v1931_v49, %v996_v36 }
 0xe77   :  { %1683 = vtanh.f32 %v999_v43  ;;  %v1541_v51 = vmul.f32 -1.442695, %v999_v43 }
 0xe78   :  { %1685 = vpow2.f32 %v1545_v46 }
 0xe7a   :  { %v978_v45 = vpop.f32.mrf.mxu2 }
 0xe7d   :  { %v1684_v32 = vpop.eup %1683 }
 0xe7e   :  { %1022 = vrot.lane.b32.xlu2 %v1684_v32, %s1753_s30  ;;  %v1686_v48 = vpop.eup %1685 }
 0xe7f   :  { %v1081_v50 = vadd.f32 1.0, %v1686_v48 }
 0xe81   :  { %1687 = vrcp.f32 %v1081_v50  ;;  %v1093_v59 = vand.u32 2147483648, %v1081_v50  ;;  %vm1087_vm5 = vweird.f32 %v1081_v50  ;;  %v1091_v60 = vand.u32 2147483647, %v1081_v50 }
 0xe82   :  { %1689 = vpow2.f32 %v1541_v51 }
 0xe83   :  { %v1094_v0 = vor.u32 1.1754944e-38, %v1093_v59  ;;  %vm1092_vm8 = vcmp.eq.f32.partialorder %v1091_v60, 8.507059e+37 }
 0xe87   :  { %v1688_v53 = vpop.eup %1687 }
 0xe88   :  { %v1083_v33 = vmul.f32 %v1688_v53, %v1081_v50  ;;  %v1690_v54 = vpop.eup %1689  ;;  %vm1088_vm4 = vweird.f32 %v1688_v53  ;;  %v2150_v50 = vld [vmem:[%s2243_s7] ss:$0 sm:$0xff] }
 0xe89   :  { %v1003_v56 = vadd.f32 1.0, %v1690_v54  ;;  %vm1089_vm7 = vmor %vm1087_vm5, %vm1088_vm4 }
 0xe8a   :  { %v1084_v55 = vsub.f32 1.0, %v1083_v33 }
 0xe8b   :  { %1691 = vrcp.f32 %v1003_v56  ;;  %v1015_v13 = vand.u32 2147483648, %v1003_v56  ;;  %vm1009_vm10 = vweird.f32 %v1003_v56  ;;  %v1013_v15 = vand.u32 2147483647, %v1003_v56 }
 0xe8c   :  { %v1085_v41 = vmul.f32 %v1688_v53, %v1084_v55 }
 0xe8d   :  { %v1016_v57 = vor.u32 1.1754944e-38, %v1015_v13  ;;  %vm1014_vm12 = vcmp.eq.f32.partialorder %v1013_v15, 8.507059e+37 }
 0xe8e   :  { %v1086_v49 = vadd.f32 %v1688_v53, %v1085_v41 }
 0xe90   :  { %v1090_v63 = vsel %vm1089_vm7, %v1688_v53, %v1086_v49 }
 0xe91   :  { %v1692_v61 = vpop.eup %1691  ;;  %v1095_v4 = vsel %vm1092_vm8, %v1094_v0, %v1090_v63 }
 0xe92   :  { %v1005_v52 = vmul.f32 %v1692_v61, %v1003_v56  ;;  %vm1010_vm9 = vweird.f32 %v1692_v61  ;;  %v1098_v22 = vmul.f32 %v1095_v4, %v2083_v17 }
 0xe93   :  { %vm1011_vm11 = vmor %vm1009_vm10, %vm1010_vm9 }
 0xe94   :  { %v1006_v47 = vsub.f32 1.0, %v1005_v52 }
 0xe96   :  { %v1007_v11 = vmul.f32 %v1692_v61, %v1006_v47 }
 0xe98   :  { %v1008_v12 = vadd.f32 %v1692_v61, %v1007_v11 }
 0xe9a   :  { %v1012_v16 = vsel %vm1011_vm11, %v1692_v61, %v1008_v12 }
 0xe9b   :  { %v1017_v20 = vsel %vm1014_vm12, %v1016_v57, %v1012_v16 }
 0xe9c   :  { %v1020_v24 = vmul.f32 %v1017_v20, %v2088_v21  ;;  %v1549_v21 = vld [vmem:[%s2255_s27 + $0xe] sm:$0x3] }
 0xe9d   :  { %v1202_v31 = vpack.c.bf16 %v1549_v21, %v1549_v21 }
 0xe9f   :  { %1551 = vmatmul.msk.bf16.vlgmr.msrb.gmra.mxu0 %vm102_vm1, %v1202_v31 }
 0xec6   :  { %v1101_v2 = vpop.permute.xlu0 %1100 }
 0xec7   :  { %v1103_v9 = vmul.f32 %v1101_v2, %v1095_v4 }
 0xec9   :  { %1105 = vrot.lane.b32.xlu2 %v1103_v9, %s1753_s30 }
 0xed8   :  { %v1023_v18 = vpop.permute.xlu2 %1022 }
 0xed9   :  { %v1025_v62 = vmul.f32 %v1023_v18, %v1017_v20 }
 0xedb   :  { %1027 = vrot.lane.b32.xlu1 %v1025_v62, %s1753_s30 }
 0xf1c   :  { %v1228_v34 = vpop.f32.mrf.mxu0 }
 0xf23   :  { %v1106_v23 = vpop.permute.xlu2 %1105 }
 0xf24   :  { %v2123_v10 = vadd.f32 %v1106_v23, %v1098_v22  ;;  %v1230_v39 = vpop.f32.mrf.mxu0 }
 0xf26   :  { %1693 = vtanh.f32 %v2123_v10 }
 0xf2c   :  { %v1694_v3 = vpop.eup %1693 }
 0xf2d   :  { %1111 = vrot.lane.b32.xlu1 %v1694_v3, %s1753_s30 }
 0xf4d   :  { %v1028_v26 = vpop.permute.xlu1 %1027 }
 0xf4e   :  { %v2128_v14 = vadd.f32 %v1028_v26, %v1020_v24 }
 0xf50   :  { %1695 = vtanh.f32 %v2128_v14 }
 0xf56   :  { %v1696_v27 = vpop.eup %1695 }
 0xf57   :  { %1033 = vrot.lane.b32.xlu0 %v1696_v27, %s1753_s30 }
 0xf9f   :  { %v1112_v28 = vpop.permute.xlu1 %1111 }
 0xfa0   :  { %v1114_v17 = vmul.f32 %v1112_v28, %v1095_v4 }
 0xfa2   :  { %v1115_v1 = vpack.c.bf16 %v1114_v17, %v1114_v17 }
 0xfa4   :  { %1136 = vrot.lane.b32.xlu0 %v1115_v1, %s1754_s5 }
 0xfc9   :  { %v1034_v29 = vpop.permute.xlu0 %1033 }
 0xfca   :  { %v2133_v5 = vmul.f32 %v1034_v29, %v1017_v20 }
 0xfcc   :  { %v1044_v30 = vpack.c.bf16 %v2133_v5, %v2133_v5 }
 0xfce   :  { %1117 = vrot.lane.b32.xlu2 %v1044_v30, %s1754_s5 }
0x1016   :  { %v1137_v38 = vpop.permute.xlu0 %1136 }
0x1017   :  { %1547 = vmatmul.msk.bf16.vlgmr.msra.gmra.mxu3 %vm85_vm6, %v1137_v38  ;;  %1550 = vmatmul.msk.bf16.vlgmr.msrb.gmra.mxu1 %vm85_vm6, %v1137_v38 }
0x1028   :  { %v1118_v37 = vpop.permute.xlu2 %1117 }
0x1029   :  { %1546 = vmatmul.msk.bf16.vlgmr.msra.gmra.mxu2 %vm85_vm6, %v1118_v37 }
0x1094   :  { %v1212_v40 = vpop.f32.mrf.mxu1 }
0x1095   :  { %v1229_v42 = vadd.f32 %v1228_v34, %v1212_v40 }
0x1097   :  { %v1232_v8 = vadd.f32 %v2114_v35, %v1229_v42 }
0x1099   :  { %1697 = vtanh.f32 %v1232_v8  ;;  %v1552_v35 = vmul.f32 -1.442695, %v1232_v8 }
0x109a   :  { %v1150_v36 = vpop.f32.mrf.mxu3 }
0x109c   :  { %v1214_v43 = vpop.f32.mrf.mxu1 }
0x109f   :  { %v1698_v45 = vpop.eup %1697 }
0x10a0   :  { %1255 = vrot.lane.b32.xlu2 %v1698_v45, %s1753_s30 }
0x10a2   :  { %v1152_v32 = vpop.f32.mrf.mxu3 }
0x10ac   :  { %v1131_v46 = vpop.f32.mrf.mxu2 }
0x10ad   :  { %v1151_v48 = vadd.f32 %v1150_v36, %v1131_v46 }
0x10af   :  { %v1154_v51 = vadd.f32 %v2150_v50, %v1151_v48 }
0x10b1   :  { %1699 = vtanh.f32 %v1154_v51  ;;  %v1548_v47 = vmul.f32 -1.442695, %v1154_v51 }
0x10b2   :  { %1701 = vpow2.f32 %v1552_v35 }
0x10b4   :  { %v1133_v53 = vpop.f32.mrf.mxu2 }
0x10b7   :  { %v1700_v33 = vpop.eup %1699 }
0x10b8   :  { %1177 = vrot.lane.b32.xlu1 %v1700_v33, %s1753_s30  ;;  %v1702_v54 = vpop.eup %1701 }
0x10b9   :  { %v1236_v55 = vadd.f32 1.0, %v1702_v54 }
0x10bb   :  { %1703 = vrcp.f32 %v1236_v55  ;;  %v1248_v61 = vand.u32 2147483648, %v1236_v55  ;;  %vm1242_vm13 = vweird.f32 %v1236_v55  ;;  %v1246_v63 = vand.u32 2147483647, %v1236_v55 }
0x10bc   :  { %1705 = vpow2.f32 %v1548_v47 }
0x10bd   :  { %v1249_v52 = vor.u32 1.1754944e-38, %v1248_v61  ;;  %vm1247_vm15 = vcmp.eq.f32.partialorder %v1246_v63, 8.507059e+37 }
0x10c1   :  { %v1704_v56 = vpop.eup %1703 }
0x10c2   :  { %v1238_v41 = vmul.f32 %v1704_v56, %v1236_v55  ;;  %vm1243_vm1 = vweird.f32 %v1704_v56  ;;  %v1706_v11 = vpop.eup %1705 }
0x10c3   :  { %vm1244_vm14 = vmor %vm1242_vm13, %vm1243_vm1  ;;  %v1158_v12 = vadd.f32 1.0, %v1706_v11 }
0x10c4   :  { %v1239_v49 = vsub.f32 1.0, %v1238_v41 }
0x10c5   :  { %1707 = vrcp.f32 %v1158_v12  ;;  %v1170_v20 = vand.u32 2147483648, %v1158_v12  ;;  %vm1164_vm2 = vweird.f32 %v1158_v12  ;;  %v1168_v62 = vand.u32 2147483647, %v1158_v12 }
0x10c6   :  { %v1240_v59 = vmul.f32 %v1704_v56, %v1239_v49 }
0x10c7   :  { %v1171_v23 = vor.u32 1.1754944e-38, %v1170_v20  ;;  %vm1169_vm4 = vcmp.eq.f32.partialorder %v1168_v62, 8.507059e+37 }
0x10c8   :  { %v1241_v60 = vadd.f32 %v1704_v56, %v1240_v59 }
0x10ca   :  { %v1245_v0 = vsel %vm1244_vm14, %v1704_v56, %v1241_v60 }
0x10cb   :  { %v1250_v4 = vsel %vm1247_vm15, %v1249_v52, %v1245_v0  ;;  %v1708_v13 = vpop.eup %1707 }
0x10cc   :  { %v1160_v15 = vmul.f32 %v1708_v13, %v1158_v12  ;;  %vm1165_vm0 = vweird.f32 %v1708_v13  ;;  %v1253_v27 = vmul.f32 %v1250_v4, %v2123_v10  ;;  %v2166_v10 = vld [vmem:[%s2237_s1] sm:$0x3] }
0x10cd   :  { %vm1166_vm3 = vmor %vm1164_vm2, %vm1165_vm0  ;;  %vm262_vm5 = vcmp.eq.s32.totalorder %v2166_v10, 1  ;;  %vm417_vm7 = vcmp.eq.s32.totalorder %v2166_v10, 2  ;;  %vm1192_vm8 = vcmp.eq.s32.totalorder %v2166_v10, 7  ;;  %vm727_vm9 = vcmp.eq.s32.totalorder %v2166_v10, 4 }
0x10ce   :  { %v1161_v16 = vsub.f32 1.0, %v1160_v15  ;;  %v418_v33 = vsel %vm417_vm7, 1, %v1752_v6  ;;  %v728_v59 = vsel %vm727_vm9, 1, %v1752_v6  ;;  %vm1037_vm10 = vcmp.eq.s32.totalorder %v2166_v10, 6 }
0x10cf   :  { %v1038_v0 = vsel %vm1037_vm10, 1, %v1752_v6  ;;  %vm572_vm14 = vcmp.eq.s32.totalorder %v2166_v10, 3  ;;  %vm882_vm15 = vcmp.eq.s32.totalorder %v2166_v10, 5  ;;  %vm1347_vm0 = vcmp.eq.s32.totalorder %v2166_v10, 8 }
0x10d0   :  { %v1162_v57 = vmul.f32 %v1708_v13, %v1161_v16  ;;  %v573_v12 = vsel %vm572_vm14, 1, %v1752_v6  ;;  %v1348_v15 = vsel %vm1347_vm0, 1, %v1752_v6  ;;  %vm1444_vm14 = vcmask 130048  }
0x10d2   :  { %v1163_v18 = vadd.f32 %v1708_v13, %v1162_v57 }
0x10d4   :  { %v1167_v22 = vsel %vm1166_vm3, %v1708_v13, %v1163_v18  ;;  %v883_v13 = vsel %vm882_vm15, 1, %v1752_v6  ;;  %vm1461_vm15 = vcmask 9216  }
0x10d5   :  { %v1172_v24 = vsel %vm1169_vm4, %v1171_v23, %v1167_v22  ;;  %v1577_v22 = vld [vmem:[%s2244_s8 + $0x8] sm:$0xff]  ;;  %v1576_v23 = vld [vmem:[%s2244_s8] sm:$0xff] }
0x10d6   :  { %v1175_v29 = vmul.f32 %v1172_v24, %v2128_v14  ;;  %v263_v14 = vsel %vm262_vm5, 1, %v1752_v6  ;;  %1390 = vmatpush.bf16.msra.mxu1 %v1577_v22 }
0x10da   :  { %1391 = vmatpush.bf16.msra.mxu1 %v1576_v23 }
0x10fa   :  { %v1256_v2 = vpop.permute.xlu2 %1255 }
0x10fb   :  { %v1258_v9 = vmul.f32 %v1256_v2, %v1250_v4 }
0x10fd   :  { %1260 = vrot.lane.b32.xlu1 %v1258_v9, %s1753_s30 }
0x112a   :  { %v1178_v3 = vpop.permute.xlu1 %1177 }
0x112b   :  { %v1180_v26 = vmul.f32 %v1178_v3, %v1172_v24 }
0x112d   :  { %1182 = vrot.lane.b32.xlu0 %v1180_v26, %s1753_s30 }
0x116f   :  { %v1261_v28 = vpop.permute.xlu1 %1260 }
0x1170   :  { %v1263_v17 = vadd.f32 %v1261_v28, %v1253_v27 }
0x1172   :  { %1709 = vtanh.f32 %v1263_v17 }
0x1178   :  { %v1710_v1 = vpop.eup %1709 }
0x1179   :  { %1266 = vrot.lane.b32.xlu0 %v1710_v1, %s1753_s30 }
0x119f   :  { %v1183_v30 = vpop.permute.xlu0 %1182 }
0x11a0   :  { %v2159_v21 = vadd.f32 %v1183_v30, %v1175_v29 }
0x11a2   :  { %1711 = vtanh.f32 %v2159_v21 }
0x11a8   :  { %v1712_v31 = vpop.eup %1711 }
0x11a9   :  { %1188 = vrot.lane.b32.xlu2 %v1712_v31, %s1753_s30 }
0x11eb   :  { %v1267_v38 = vpop.permute.xlu0 %1266 }
0x11ec   :  { %v1269_v37 = vmul.f32 %v1267_v38, %v1250_v4 }
0x11ee   :  { %v1270_v34 = vpack.c.bf16 %v1269_v37, %v1269_v37 }
0x11f0   :  { %1291 = vrot.lane.b32.xlu2 %v1270_v34, %s1754_s5 }
0x11f8   :  { %265 = vperm.xlu2 %1583, %v263_v14  }
0x1200   :  { %730 = vperm.xlu2 %1583, %v728_v59  }
0x1203   :  { %v1189_v39 = vpop.permute.xlu2 %1188 }
0x1204   :  { %v2171_v40 = vmul.f32 %v1189_v39, %v1172_v24 }
0x1206   :  { %v1199_v42 = vpack.c.bf16 %v2171_v40, %v2171_v40 }
0x1208   :  { %1272 = vrot.lane.b32.xlu1 %v1199_v42, %s1754_s5  ;;  %1040 = vperm.xlu2 %1583, %v1038_v0  }
0x1210   :  { %1350 = vperm.xlu2 %1583, %v1348_v15  }
0x124a   :  { %v1292_v8 = vpop.permute.xlu2 %1291 }
0x124b   :  { %1554 = vmatmul.msk.bf16.vlgmr.msrb.gmra.mxu3 %vm85_vm6, %v1292_v8 }
0x1252   :  { %v266_v62 = vpop.permute.xlu2 %265 }
0x1253   :  { %vm267_vm2 = vcmp.eq.s32.totalorder %v266_v62, 1 }
0x1254   :  { %v268_v26 = vsel %vm267_vm2, %v1948_v44, 0.0 }
0x125a   :  { %v731_v3 = vpop.permute.xlu2 %730 }
0x125b   :  { %vm732_vm5 = vcmp.eq.s32.totalorder %v731_v3, 1 }
0x1262   :  { %v1041_v17 = vpop.permute.xlu2 %1040 }
0x126a   :  { %v1351_v38 = vpop.permute.xlu2 %1350 }
0x126b   :  { %vm1352_vm10 = vcmp.eq.s32.totalorder %v1351_v38, 1 }
0x127a   :  { %v1273_v36 = vpop.permute.xlu1 %1272 }
0x127b   :  { %1553 = vmatmul.msk.bf16.vlgmr.msrb.gmra.mxu2 %vm85_vm6, %v1273_v36 }
0x12ce   :  { %v1305_v43 = vpop.f32.mrf.mxu3 }
0x12d6   :  { %v1307_v45 = vpop.f32.mrf.mxu3 }
0x12d7   :  { %v1588_v45 = vld [vmem:[%s2245_s9] ss:$0 sm:$0xff] }
0x12fe   :  { %v1286_v32 = vpop.f32.mrf.mxu2 }
0x12ff   :  { %v1306_v46 = vadd.f32 %v1305_v43, %v1286_v32 }
0x1301   :  { %v1309_v48 = vadd.f32 %v2150_v50, %v1306_v46  ;;  %v1193_v50 = vsel %vm1192_vm8, 1, %v1752_v6  ;;  %vm1042_vm8 = vcmp.eq.s32.totalorder %v1041_v17, 1 }
0x1303   :  { %1713 = vtanh.f32 %v1309_v48  ;;  %v1555_v35 = vmul.f32 -1.442695, %v1309_v48 }
0x1305   :  { %1715 = vpow2.f32 %v1555_v35 }
0x1306   :  { %v1288_v51 = vpop.f32.mrf.mxu2 }
0x1309   :  { %v1714_v53 = vpop.eup %1713 }
0x130a   :  { %1332 = vrot.lane.b32.xlu0 %v1714_v53, %s1753_s30  ;;  %v1589_v53 = vld [vmem:[%s2248_s12] ss:$0 sm:$0xff] }
0x130b   :  { %v1716_v54 = vpop.eup %1715 }
0x130c   :  { %v1313_v55 = vadd.f32 1.0, %v1716_v54 }
0x130e   :  { %1717 = vrcp.f32 %v1313_v55  ;;  %v1325_v63 = vand.u32 2147483648, %v1313_v55  ;;  %vm1319_vm12 = vweird.f32 %v1313_v55  ;;  %v1323_v52 = vand.u32 2147483647, %v1313_v55 }
0x1310   :  { %v1326_v4 = vor.u32 1.1754944e-38, %v1325_v63  ;;  %vm1324_vm13 = vcmp.eq.f32.partialorder %v1323_v52, 8.507059e+37  ;;  %v1592_v63 = vld [vmem:[%s2251_s15] ss:$0 sm:$0xff] }
0x1312   :  { %420 = vperm.xlu0 %1584, %v418_v33  }
0x1314   :  { %v1718_v56 = vpop.eup %1717 }
0x1315   :  { %v1315_v41 = vmul.f32 %v1718_v56, %v1313_v55  ;;  %vm1320_vm11 = vweird.f32 %v1718_v56 }
0x1316   :  { %vm1321_vm1 = vmor %vm1319_vm12, %vm1320_vm11 }
0x1317   :  { %v1316_v49 = vsub.f32 1.0, %v1315_v41 }
0x1319   :  { %v1317_v60 = vmul.f32 %v1718_v56, %v1316_v49  ;;  %v1591_v49 = vld [vmem:[%s2247_s11] ss:$0 sm:$0xff] }
0x131a   :  { %1195 = vperm.xlu0 %1584, %v1193_v50  }
0x131b   :  { %v1318_v61 = vadd.f32 %v1718_v56, %v1317_v60 }
0x131d   :  { %v1322_v2 = vsel %vm1321_vm1, %v1718_v56, %v1318_v61  ;;  %v1590_v56 = vld [vmem:[%s2246_s10] ss:$0 sm:$0xff]  ;;  %s1470_s10 = sshll.u32 %s2252_s16, 4  ;;  %s1471_s10 = int_to_ptr.hbm [resolvable:$true] %s1470_s10 }
0x131e   :  { %v1327_v47 = vsel %vm1324_vm13, %v1326_v4, %v1322_v2 }
0x131f   :  { %v1330_v16 = vmul.f32 %v1327_v47, %v2159_v21 }
0x137c   :  { %v1333_v9 = vpop.permute.xlu0 %1332 }
0x137d   :  { %v1335_v11 = vmul.f32 %v1333_v9, %v1327_v47 }
0x137f   :  { %1337 = vrot.lane.b32.xlu1 %v1335_v11, %s1753_s30 }
0x1384   :  { %v421_v24 = vpop.permute.xlu0 %420 }
0x1385   :  { %vm422_vm3 = vcmp.eq.s32.totalorder %v421_v24, 1 }
0x1386   :  { %v423_v28 = vsel %vm422_vm3, %v1990_v58, %v268_v26 }
0x1387   :  { %575 = vperm.xlu1 %1585, %v573_v12  }
0x138c   :  { %v1196_v21 = vpop.permute.xlu0 %1195 }
0x138d   :  { %vm1197_vm9 = vcmp.eq.s32.totalorder %v1196_v21, 1 }
0x138f   :  { %885 = vperm.xlu1 %1585, %v883_v13  }
0x13f1   :  { %v1338_v57 = vpop.permute.xlu1 %1337 }
0x13f2   :  { %v1340_v18 = vadd.f32 %v1338_v57, %v1330_v16 }
0x13f4   :  { %1719 = vtanh.f32 %v1340_v18 }
0x13f9   :  { %v576_v6 = vpop.permute.xlu1 %575 }
0x13fa   :  { %v1720_v20 = vpop.eup %1719  ;;  %vm577_vm4 = vcmp.eq.s32.totalorder %v576_v6, 1 }
0x13fb   :  { %1343 = vrot.lane.b32.xlu1 %v1720_v20, %s1753_s30  ;;  %v578_v1 = vsel %vm577_vm4, %v2021_v7, %v423_v28 }
0x13fc   :  { %v733_v29 = vsel %vm732_vm5, %v2057_v19, %v578_v1 }
0x1401   :  { %v886_v27 = vpop.permute.xlu1 %885 }
0x1402   :  { %vm887_vm7 = vcmp.eq.s32.totalorder %v886_v27, 1 }
0x1403   :  { %v888_v30 = vsel %vm887_vm7, %v2093_v25, %v733_v29  ;;  %v1405_v25 = vld [vmem:[%s2249_s13] sm:$0x1] }
0x1404   :  { %v1043_v31 = vsel %vm1042_vm8, %v2133_v5, %v888_v30  ;;  %v1406_v5 = vadd.f32 1e-05, %v1405_v25 }
0x1405   :  { %v1198_v34 = vsel %vm1197_vm9, %v2171_v40, %v1043_v31  ;;  %v1578_v40 = vld [vmem:[%s2250_s14] sm:$0xff] }
0x1406   :  { %1721 = vrsqrt.f32 %v1406_v5  ;;  %1455 = vmatpush.bf16.msra.mxu0 %v1578_v40  ;;  %vm1413_vm12 = vweird.f32 %v1406_v5 }
0x140c   :  { %v1722_v39 = vpop.eup %1721 }
0x140d   :  { %v1408_v42 = vmul.f32 %v1722_v39, %v1406_v5  ;;  %vm1414_vm1 = vweird.f32 %v1722_v39 }
0x140f   :  { %v1409_v8 = vmul.f32 %v1722_v39, %v1408_v42 }
0x1411   :  { %v1410_v36 = vmul.f32 0.5, %v1409_v8 }
0x1413   :  { %v1411_v43 = vsub.f32 1.5, %v1410_v36 }
0x1415   :  { %v1412_v32 = vmul.f32 %v1722_v39, %v1411_v43 }
0x146d   :  { %v1344_v37 = vpop.permute.xlu1 %1343 }
0x146e   :  { %v1346_v44 = vmul.f32 %v1344_v37, %v1327_v47 }
0x1470   :  { %v1353_v58 = vsel %vm1352_vm10, %v1346_v44, %v1198_v34 }
0x1471   :  { %v1355_v10 = vmul.f32 0.01, %v1353_v58  ;;  %vm1354_vm11 = vcmp.gt.f32.partialorder %v1353_v58, 0.0 }
0x1473   :  { %v1356_v7 = vsel %vm1354_vm11, %v1353_v58, %v1355_v10 }
0x1474   :  { %v1357_v14 = vpack.c.bf16 %v1356_v7, %v1356_v7 }
0x1476   :  { %1367 = vrot.lane.b32.xlu0 %v1357_v14, %s1754_s5 }
0x14e8   :  { %v1368_v19 = vpop.permute.xlu0 %1367 }
0x14e9   :  { %1564 = vmatmul.msk.bf16.vlgmr.msra.gmra.mxu1 %vm85_vm6, %v1368_v19  ;;  %vm1415_vm6 = vmor %vm1413_vm12, %vm1414_vm1 }
0x14ea   :  { %v1416_v51 = vsel %vm1415_vm6, %v1722_v39, %v1412_v32 }
0x14eb   :  { %v1418_v35 = vperm.slane %v1416_v51, 0 }
0x1566   :  { %v1393_v46 = vpop.f32.mrf.mxu1 }
0x1567   :  { %v1394_v48 = vadd.f32 %v1588_v45, %v1393_v46 }
0x1569   :  { %vm1397_vm13 = vcmp.gt.f32.partialorder %v1394_v48, 0.0  ;;  %v1398_v33 = vmul.f32 0.01, %v1394_v48 }
0x156b   :  { %v1399_v54 = vsel %vm1397_vm13, %v1394_v48, %v1398_v33 }
0x156c   :  { %v1404_v55 = vsub.f32 %v1399_v54, %v1589_v53 }
0x156e   :  { %v1420_v41 = vmul.f32 %v1418_v35, %v1404_v55  ;;  %v1395_v50 = vpop.f32.mrf.mxu1 }
0x1570   :  { %v1425_v59 = vmul.f32 %v1590_v56, %v1420_v41 }
0x1572   :  { %v1430_v60 = vadd.f32 %v1591_v49, %v1425_v59 }
0x1574   :  { %v1431_v61 = vpack.c.bf16 %v1430_v60, %v1430_v60 }
0x1576   :  { %1569 = vmatmul.msk.bf16.vlgmr.msra.gmra.mxu0 %vm1444_vm14, %v1431_v61 }
0x15f3   :  { %v1457_v0 = vpop.f32.mrf.mxu0 }
0x15f4   :  { %v1458_v52 = vadd.f32 %v1592_v63, %v1457_v0 }
0x15f6   :  { %1462 = vst.msk [vmem:[#allocation2] sm:$0x3] %vm1461_vm15, %v1458_v52 }
0x15f7   :  { %1473 = dma.vmem_to_hbm [thread:$0]  %s1469_s25, 32, %s1471_s10, [#allocation3]  }
0x15fb   :  { %v1459_v2 = vpop.f32.mrf.mxu0 }
0x15fc   :  { %1750 = dma.done.wait [#allocation3], 32  }
0x15fd   :  { %1751 = vsyncadd [#allocation3], 4294967264 }
0x15fe   :  { %1478 = vsyncpa [#allocation3], 1 }

</bundles_post_ra>
